<compile_context>
chip_gen: v5e
topology: v5e:2x2
jax: 0.10.0
libtpu: 0.0.40
codegen_flags: <defaults>
</compile_context>

<pallas_src>
import functools
import math

import jax
import jax.numpy as jnp
import numpy as np
from jax.experimental import pallas as pl
from jax.experimental.pallas import tpu as pltpu

LANES = 128
_BCE_FLOOR = 0.02


# --------------------------------------------------------------------------- #
# Kernel
# --------------------------------------------------------------------------- #
def _composite_loss_kernel(x_ref, t_ref, out_ref, *, n_vectors, n_scales,
                           focal_gamma, inv_b_scale, relative_eps,
                           total_bc, total_s, bc_tile, s_tile,
                           needs_bounds_mask):
    """One (bc_tile, F, s_tile, 128) tile -> per-loss lane-partial (sum, count)."""
    j = pl.program_id(1)
    n_losses = 1 + n_vectors + n_scales

    @pl.when(j == 0)
    def _init():
        out_ref[...] = jnp.zeros_like(out_ref)

    if needs_bounds_mask:
        i = pl.program_id(0)
        slab = (bc_tile, s_tile, LANES)
        bc_ids = jax.lax.broadcasted_iota(jnp.int32, slab, 0) + i * bc_tile
        s_ids = jax.lax.broadcasted_iota(jnp.int32, slab, 1) + j * s_tile
        inbounds = jnp.logical_and(bc_ids < total_bc, s_ids < total_s)
    else:
        inbounds = None

    def fld(ref, idx):
        # Per-field read directly from the VMEM block: [bc_tile, s_tile, 128].
        return ref[:, idx].astype(jnp.float32)

    def valid_mask(target):
        m = jnp.logical_not(jnp.isnan(target))
        if inbounds is not None:
            m = jnp.logical_and(m, inbounds)
        return m

    def accumulate(row, loss_vals, mask):
        # (bc, s) fold -> (1, 128) lane-partials, accumulated into the
        # bc-tile-resident output rows (loss sum row, then count row).
        out_ref[:, row, :] += jnp.sum(
            jnp.where(mask, loss_vals, 0.0), axis=(0, 1)).reshape(1, LANES)
        out_ref[:, n_losses + row, :] += jnp.sum(
            mask.astype(jnp.float32), axis=(0, 1)).reshape(1, LANES)

    nv = n_vectors

    # ---------------- confidence: Bce(focal_gamma, detach_focal=True) --------
    xc = fld(x_ref, 0)
    tc = fld(t_ref, 0)
    m = valid_mask(tc)
    tcs = jnp.where(m, tc, 0.0)                      # NaN-safe targets
    t01 = jnp.where(tcs > 0.0, 1.0, tcs)             # t_zeroone[t > 0] = 1
    # binary_cross_entropy_with_logits, reduction='none' (stable form)
    bce = jnp.maximum(xc, 0.0) - xc * t01 + jnp.log1p(jnp.exp(-jnp.abs(xc)))
    bce = jnp.maximum(bce, _BCE_FLOOR)               # clamp_min(bce, 0.02)
    if focal_gamma != 0.0:
        # pt computed from the clamped bce, matching the PyTorch code.
        one_m_pt = 1.0 - jnp.exp(-bce)
        if focal_gamma == 1.0:
            focal = one_m_pt
        elif focal_gamma == 2.0:
            focal = one_m_pt * one_m_pt              # VALU, not pow/EUP
        elif float(focal_gamma).is_integer() and 0.0 < focal_gamma <= 4.0:
            focal = one_m_pt
            for _ in range(int(focal_gamma) - 1):
                focal = focal * one_m_pt
        else:
            focal = one_m_pt ** focal_gamma
        # TODO(synk): detach_focal=True only affects gradients; a custom VJP
        #             (stop_gradient on `focal`) is needed before training use.
        bce = focal * bce
    # bce[t_zeroone != t] *= t   (fractional targets act as weights)
    bce = jnp.where(t01 != tcs, bce * tcs, bce)
    accumulate(0, bce, m)

    # ---------------- regression: laplace_loss per vector --------------------
    for k in range(nv):
        t1 = fld(t_ref, 1 + 2 * k)
        m = valid_mask(t1)
        t1s = jnp.where(m, t1, 0.0)
        t2s = jnp.where(m, fld(t_ref, 2 + 2 * k), 0.0)
        tbs = jnp.where(m, fld(t_ref, 1 + 2 * nv + k), 0.0)
        x1 = fld(x_ref, 1 + 2 * k)
        x2 = fld(x_ref, 2 + 2 * k)
        xb = fld(x_ref, 1 + 2 * nv + k)
        norm = jnp.sqrt((x1 - t1s) ** 2 + (x2 - t2s) ** 2
                        + jnp.maximum(tbs * tbs, 1e-4))  # clamp_min(bmin^2,1e-4)
        bsp = jnp.maximum(jax.nn.softplus(xb), tbs)       # max(softplus(b), bmin)
        ll = jnp.log(bsp) + norm / bsp                    # exact reciprocal
        accumulate(1 + k, ll, m)

    # ---------------- scales: ScaleLoss(b, relative=True, eps) ---------------
    for k in range(n_scales):
        ts = fld(t_ref, 1 + 3 * nv + k)
        m = valid_mask(ts)
        tss = jnp.where(m, ts, 1.0)
        xs = fld(x_ref, 1 + 3 * nv + k)
        sl = jnp.abs(jax.nn.softplus(xs) - tss) * inv_b_scale
        sl = sl * pl.reciprocal(relative_eps + tss, approx=True)  # denom >= eps
        accumulate(1 + nv + k, sl, m)


# --------------------------------------------------------------------------- #
# Tile planning (VMEM-budgeted, per-generation via get_tpu_info)
# --------------------------------------------------------------------------- #
def _tile_plan(total_bc, total_s, num_fields, itemsize):
    try:
        vmem_cap = int(pltpu.get_tpu_info().vmem_capacity_bytes)
    except Exception:  # pragma: no cover - conservative fallback (v7x per-TC)
        vmem_cap = 64 << 20

    # Conservative scoped-VMEM cap: ~52 MiB on v7x (64 MiB/TC, headroom for
    # compiler scratch + output double-buffers), ~100 MiB on v5e/v6e.
    vmem_limit = int(min(vmem_cap - (12 << 20), 100 << 20))

    # Bytes per (bc, s) row of the block:
    #   inputs : 2 arrays x 2 pipeline buffers x F fields x 128 lanes x itemsize
    #   working: ~10 live f32 slabs (per-field reads + temps) during laplace
    in_row = 2 * 2 * num_fields * LANES * itemsize
    work_row = 10 * LANES * 4
    budget = max(1 << 20, vmem_limit - (4 << 20))
    max_rows = max(8, budget // (in_row + work_row))

    s_align = 16 if itemsize == 2 else 8     # bf16 sublane packing
    if max_rows >= total_s:
        s_tile = total_s
        bc_tile = int(min(total_bc, max(1, max_rows // max(total_s, 1))))
    else:
        s_tile = int(min(total_s, max(s_align, (max_rows // s_align) * s_align)))
        bc_tile = 1

    # Keep >= 2 blocks on the 'parallel' bc axis so both TensorCores of a
    # megacore part (v7x) get work instead of a single serial reduction loop.
    if total_bc >= 2:
        bc_tile = int(min(bc_tile, pl.cdiv(total_bc, 2)))

    return bc_tile, s_tile, vmem_limit


# --------------------------------------------------------------------------- #
# Device-side entry point (no host sync) -- the training hot path.
# Accepts f32 or bf16 inputs; bf16 is preferred on v5e/v6e (HBM-bound regime),
# math is f32 inside the kernel either way.
# --------------------------------------------------------------------------- #
@functools.partial(
    jax.jit,
    static_argnames=("n_vectors", "n_scales", "focal_gamma", "b_scale",
                     "relative_eps", "bc_tile", "s_tile"))
def composite_loss_sums(x, t, *, n_vectors, n_scales, focal_gamma=1.0,
                        b_scale=1.0, relative_eps=0.1,
                        bc_tile=None, s_tile=None):
    """Returns (loss_sums / batch_size, valid_counts) as device arrays."""
    B, C, F, H, W = x.shape
    assert F == 1 + 3 * n_vectors + n_scales
    assert t.shape == x.shape
    n_losses = 1 + n_vectors + n_scales

    BC = B * C
    HW = H * W

    xr = x.reshape(BC, F, HW)       # free reshapes: no transpose, no copy
    tr = t.reshape(BC, F, HW)
    if HW % LANES != 0:
        # TODO(synk): fallback pad (one extra HBM pass); the zero-copy path
        #             requires H*W % 128 == 0.
        pad = LANES - HW % LANES
        xr = jnp.pad(xr, ((0, 0), (0, 0), (0, pad)))
        tr = jnp.pad(tr, ((0, 0), (0, 0), (0, pad)), constant_values=float('nan'))
        HW = HW + pad
    S = HW // LANES
    xr = xr.reshape(BC, F, S, LANES)
    tr = tr.reshape(BC, F, S, LANES)

    itemsize = jnp.dtype(x.dtype).itemsize
    auto_bc, auto_s, vmem_limit = _tile_plan(BC, S, F, itemsize)
    bc_t = int(min(BC, bc_tile if bc_tile is not None else auto_bc))
    s_t = int(min(S, s_tile if s_tile is not None else auto_s))

    n_bc = pl.cdiv(BC, bc_t)
    n_s = pl.cdiv(S, s_t)
    needs_mask = (BC % bc_t != 0) or (S % s_t != 0)

    kernel = functools.partial(
        _composite_loss_kernel,
        n_vectors=n_vectors, n_scales=n_scales,
        focal_gamma=float(focal_gamma),
        inv_b_scale=1.0 / float(b_scale),
        relative_eps=float(relative_eps),
        total_bc=BC, total_s=S, bc_tile=bc_t, s_tile=s_t,
        needs_bounds_mask=needs_mask)

    out = pl.pallas_call(
        kernel,
        out_shape=jax.ShapeDtypeStruct((n_bc, 2 * n_losses, LANES), jnp.float32),
        grid_spec=pltpu.PrefetchScalarGridSpec(
            num_scalar_prefetch=0,
            grid=(n_bc, n_s),
            in_specs=[
                pl.BlockSpec((bc_t, F, s_t, LANES), lambda i, j: (i, 0, j, 0)),
                pl.BlockSpec((bc_t, F, s_t, LANES), lambda i, j: (i, 0, j, 0)),
            ],
            out_specs=pl.BlockSpec((1, 2 * n_losses, LANES),
                                   lambda i, j: (i, 0, 0)),
        ),
        compiler_params=pltpu.CompilerParams(
            dimension_semantics=("parallel", "arbitrary"),
            vmem_limit_bytes=vmem_limit),
    )(xr, tr)

    loss_sums = jnp.sum(out[:, :n_losses, :], axis=(0, 2)) / float(B)
    counts = jnp.sum(out[:, n_losses:, :], axis=(0, 2))
    return loss_sums, counts


# --------------------------------------------------------------------------- #
# Convenience wrapper with the PyTorch list semantics (does ONE host sync).
# Training code that just needs the scalar losses should use
# composite_loss_sums() directly and stay on device.
# --------------------------------------------------------------------------- #
def composite_loss_forward(x, t, *, n_vectors, n_scales):
    """Mirrors CompositeLoss.forward: [ce_loss] + reg_losses + scale_losses."""
    if t is None:
        return [None for _ in range(1 + n_vectors + n_scales)]
    # TODO(synk): negative_sampling branch (randperm-based negative selection +
    #             dict bookkeeping) and bce_blackout column selection have no
    #             static-shape Pallas equivalent; defaults (False / None) are
    #             implemented.
    sums, counts = composite_loss_sums(x, t, n_vectors=n_vectors,
                                       n_scales=n_scales)
    sums, counts = jax.device_get((sums, counts))   # single host transfer

    all_losses = [float(sums[0]) if counts[0] > 0 else None]          # confidence
    for i in range(n_vectors):                                        # regressions
        all_losses.append(float(sums[1 + i]) if counts[1 + i] > 0 else None)
    for i in range(n_scales):                                         # scales
        all_losses.append(float(sums[1 + n_vectors + i]))
    if not all(math.isfinite(l) for l in all_losses if l is not None):
        raise Exception('found a loss that is not finite: {}'.format(all_losses))
    return all_losses


# --------------------------------------------------------------------------- #
# Pure-JAX reference (for numeric verification)
# --------------------------------------------------------------------------- #
def _reference_sums(x, t, *, n_vectors, n_scales, focal_gamma=1.0,
                    b_scale=1.0, relative_eps=0.1):
    B = x.shape[0]
    nv = n_vectors
    sums, counts = [], []

    xc, tc = x[:, :, 0], t[:, :, 0]
    m = jnp.logical_not(jnp.isnan(tc))
    tcs = jnp.where(m, tc, 0.0)
    t01 = jnp.where(tcs > 0.0, 1.0, tcs)
    bce = jnp.maximum(xc, 0.0) - xc * t01 + jnp.log1p(jnp.exp(-jnp.abs(xc)))
    bce = jnp.maximum(bce, _BCE_FLOOR)
    if focal_gamma != 0.0:
        bce = (1.0 - jnp.exp(-bce)) ** focal_gamma * bce
    bce = jnp.where(t01 != tcs, bce * tcs, bce)
    sums.append(jnp.sum(jnp.where(m, bce, 0.0)) / float(B))
    counts.append(jnp.sum(m))

    for k in range(nv):
        x1, x2, xb = x[:, :, 1 + 2 * k], x[:, :, 2 + 2 * k], x[:, :, 1 + 2 * nv + k]
        t1, t2, tb = t[:, :, 1 + 2 * k], t[:, :, 2 + 2 * k], t[:, :, 1 + 2 * nv + k]
        m = jnp.logical_not(jnp.isnan(t1))
        t1s = jnp.where(m, t1, 0.0)
        t2s = jnp.where(m, t2, 0.0)
        tbs = jnp.where(m, tb, 0.0)
        norm = jnp.sqrt((x1 - t1s) ** 2 + (x2 - t2s) ** 2
                        + jnp.maximum(tbs * tbs, 1e-4))
        bsp = jnp.maximum(jax.nn.softplus(xb), tbs)
        ll = jnp.log(bsp) + norm / bsp
        sums.append(jnp.sum(jnp.where(m, ll, 0.0)) / float(B))
        counts.append(jnp.sum(m))

    for k in range(n_scales):
        xs, ts = x[:, :, 1 + 3 * nv + k], t[:, :, 1 + 3 * nv + k]
        m = jnp.logical_not(jnp.isnan(ts))
        tss = jnp.where(m, ts, 1.0)
        sl = jnp.abs(jax.nn.softplus(xs) - tss) / b_scale
        sl = sl / (relative_eps + tss)
        sums.append(jnp.sum(jnp.where(m, sl, 0.0)) / float(B))
        counts.append(jnp.sum(m))

    return jnp.stack(sums), jnp.stack([c.astype(jnp.float32) for c in counts])


# --------------------------------------------------------------------------- #
# Demo / self-check
# --------------------------------------------------------------------------- #
def _build_example(key, B, C, H, W):
    n_vectors, n_scales = 1, 1
    F = 1 + 3 * n_vectors + n_scales  # = 5
    k1, k2, k3, k4, k5, k6, k7 = jax.random.split(key, 7)
    x = jax.random.normal(k1, (B, C, F, H, W), jnp.float32)

    u = jax.random.uniform(k2, (B, C, H, W))
    t_conf = jnp.where(u < 0.3, jnp.nan,
                       jnp.where(u > 0.8, 1.0,
                                 jnp.where(u > 0.7, 0.5, 0.0)))
    reg_valid = jax.random.uniform(k3, (B, C, H, W)) > 0.5
    t1 = jnp.where(reg_valid, 2.0 * jax.random.normal(k4, (B, C, H, W)), jnp.nan)
    t2 = jnp.where(reg_valid, 2.0 * jax.random.normal(k5, (B, C, H, W)), jnp.nan)
    t_bmin = jnp.where(reg_valid, 0.5, jnp.nan)
    sc_valid = jax.random.uniform(k6, (B, C, H, W)) > 0.4
    t_sc = jnp.where(sc_valid,
                     jnp.abs(jax.random.normal(k7, (B, C, H, W))) + 0.1,
                     jnp.nan)
    t = jnp.stack([t_conf, t1, t2, t_bmin, t_sc], axis=2)  # [B, C, F, H, W]
    return x, t, n_vectors, n_scales


if __name__ == "__main__":
    key = jax.random.PRNGKey(0)
    k_a, k_b = jax.random.split(key)

    # Case 1: evenly tiled f32 shapes (B=2, C=4, H=W=16 -> BC=8, S=2).
    x, t, nv, ns = _build_example(k_a, B=2, C=4, H=16, W=16)
    sums, counts = composite_loss_sums(x, t, n_vectors=nv, n_scales=ns)
    jax.block_until_ready((sums, counts))
    ref_sums, ref_counts = _reference_sums(x, t, n_vectors=nv, n_scales=ns)
    np.testing.assert_allclose(np.asarray(counts), np.asarray(ref_counts), atol=0.5)
    np.testing.assert_allclose(np.asarray(sums), np.asarray(ref_sums),
                               rtol=1e-2, atol=1e-2)

    losses = composite_loss_forward(x, t, n_vectors=nv, n_scales=ns)
    assert len(losses) == 1 + nv + ns

    # Case 2: bf16 inputs (HBM-bandwidth path for v5e/v6e) + ragged B*C tile
    # (BC=3, bc_tile=2) -> exercises the in-kernel bounds-mask path.
    x_b, t_b, nv_b, ns_b = _build_example(k_b, B=1, C=3, H=16, W=16)
    x_bf = x_b.astype(jnp.bfloat16)
    t_bf = t_b.astype(jnp.bfloat16)
    sums_b, counts_b = composite_loss_sums(x_bf, t_bf, n_vectors=nv_b,
                                           n_scales=ns_b, bc_tile=2)
    jax.block_until_ready((sums_b, counts_b))
    ref_sums_b, ref_counts_b = _reference_sums(
        x_bf.astype(jnp.float32), t_bf.astype(jnp.float32),
        n_vectors=nv_b, n_scales=ns_b)
    np.testing.assert_allclose(np.asarray(counts_b), np.asarray(ref_counts_b),
                               atol=0.5)
    np.testing.assert_allclose(np.asarray(sums_b), np.asarray(ref_sums_b),
                               rtol=1e-2, atol=1e-2)

    print("KERNEL_OK")
</pallas_src>

<mosaic_0001>
module attributes {stable_mosaic.version = 11 : i64} {
  func.func @_composite_loss_kernel(%arg0: i32, %arg1: i32, %arg2: memref<4x5x2x128xf32, #tpu.memory_space<vmem>>, %arg3: memref<4x5x2x128xf32, #tpu.memory_space<vmem>>, %arg4: memref<1x6x128xf32, #tpu.memory_space<vmem>>) attributes {dimension_semantics = [#tpu.dimension_semantics<parallel>, #tpu.dimension_semantics<arbitrary>], iteration_bounds = array<i64: 2, 1>, scalar_prefetch = 0 : i64, scratch_operands = 0 : i64, tpu.core_type = #tpu.core_type<tc>, window_params = [{transform_indices = @transform_0, window_bounds = array<i64: 4, 5, 2, 128>}, {transform_indices = @transform_1, window_bounds = array<i64: 4, 5, 2, 128>}, {transform_indices = @transform_2, window_bounds = array<i64: 1, 6, 128>}]} {
    %c0_i32 = arith.constant 0 : i32
    %0 = arith.cmpi eq, %arg1, %c0_i32 : i32
    %1 = arith.extui %0 : i1 to i32
    %c0_i32_0 = arith.constant 0 : i32
    %2 = arith.cmpi ne, %1, %c0_i32_0 : i32
    scf.if %2 {
      %cst_101 = arith.constant 0.000000e+00 : f32
      %174 = vector.broadcast %cst_101 : f32 to vector<1x6x128xf32>
      %c0_102 = arith.constant 0 : index
      %c0_103 = arith.constant 0 : index
      %c0_104 = arith.constant 0 : index
      %175 = vector.load %arg4[%c0_102, %c0_103, %c0_104] : memref<1x6x128xf32, #tpu.memory_space<vmem>>, vector<1x6x128xf32>
      tpu.vector_store %arg4[%c0_102, %c0_103, %c0_104], %174 {strides = array<i32>} : memref<1x6x128xf32, #tpu.memory_space<vmem>>, vector<1x6x128xf32>,
    } else {
    }
    %c0 = arith.constant 0 : index
    %c0_1 = arith.constant 0 : index
    %c0_2 = arith.constant 0 : index
    %c0_3 = arith.constant 0 : index
    %3 = vector.load %arg2[%c0, %c0_1, %c0_2, %c0_3] : memref<4x5x2x128xf32, #tpu.memory_space<vmem>>, vector<4x1x2x128xf32>
    %4 = vector.shape_cast %3 : vector<4x1x2x128xf32> to vector<4x2x128xf32>
    %c0_4 = arith.constant 0 : index
    %c0_5 = arith.constant 0 : index
    %c0_6 = arith.constant 0 : index
    %c0_7 = arith.constant 0 : index
    %5 = vector.load %arg3[%c0_4, %c0_5, %c0_6, %c0_7] : memref<4x5x2x128xf32, #tpu.memory_space<vmem>>, vector<4x1x2x128xf32>
    %6 = vector.shape_cast %5 : vector<4x1x2x128xf32> to vector<4x2x128xf32>
    %7 = arith.cmpf one, %6, %6 : vector<4x2x128xf32>
    %cst = arith.constant dense<true> : vector<4x2x128xi1>
    %8 = arith.xori %7, %cst : vector<4x2x128xi1>
    %cst_8 = arith.constant 0.000000e+00 : f32
    %9 = vector.broadcast %cst_8 : f32 to vector<4x2x128xf32>
    %10 = arith.select %8, %6, %9 : vector<4x2x128xi1>, vector<4x2x128xf32>
    %cst_9 = arith.constant 0.000000e+00 : f32
    %11 = vector.broadcast %cst_9 : f32 to vector<4x2x128xf32>
    %12 = arith.cmpf ogt, %10, %11 : vector<4x2x128xf32>
    %cst_10 = arith.constant 1.000000e+00 : f32
    %13 = vector.broadcast %cst_10 : f32 to vector<4x2x128xf32>
    %14 = arith.select %12, %13, %10 : vector<4x2x128xi1>, vector<4x2x128xf32>
    %cst_11 = arith.constant 0.000000e+00 : f32
    %15 = vector.broadcast %cst_11 : f32 to vector<4x2x128xf32>
    %16 = arith.maximumf %4, %15 : vector<4x2x128xf32>
    %17 = arith.mulf %4, %14 : vector<4x2x128xf32>
    %18 = arith.subf %16, %17 : vector<4x2x128xf32>
    %19 = math.absf %4 : vector<4x2x128xf32>
    %cst_12 = arith.constant 0.000000e+00 : f32
    %20 = vector.broadcast %cst_12 : f32 to vector<4x2x128xf32>
    %21 = arith.subf %20, %19 : vector<4x2x128xf32>
    %22 = math.exp %21 : vector<4x2x128xf32>
    %23 = math.log1p %22 : vector<4x2x128xf32>
    %24 = arith.addf %18, %23 : vector<4x2x128xf32>
    %cst_13 = arith.constant 2.000000e-02 : f32
    %25 = vector.broadcast %cst_13 : f32 to vector<4x2x128xf32>
    %26 = arith.maximumf %24, %25 : vector<4x2x128xf32>
    %cst_14 = arith.constant 0.000000e+00 : f32
    %27 = vector.broadcast %cst_14 : f32 to vector<4x2x128xf32>
    %28 = arith.subf %27, %26 : vector<4x2x128xf32>
    %29 = math.exp %28 : vector<4x2x128xf32>
    %cst_15 = arith.constant 1.000000e+00 : f32
    %30 = vector.broadcast %cst_15 : f32 to vector<4x2x128xf32>
    %31 = arith.subf %30, %29 : vector<4x2x128xf32>
    %32 = arith.mulf %31, %26 : vector<4x2x128xf32>
    %33 = arith.cmpf one, %14, %10 : vector<4x2x128xf32>
    %34 = arith.mulf %32, %10 : vector<4x2x128xf32>
    %35 = arith.select %33, %34, %32 : vector<4x2x128xi1>, vector<4x2x128xf32>
    %c0_16 = arith.constant 0 : index
    %c0_17 = arith.constant 0 : index
    %c0_18 = arith.constant 0 : index
    %36 = vector.load %arg4[%c0_16, %c0_17, %c0_18] : memref<1x6x128xf32, #tpu.memory_space<vmem>>, vector<1x1x128xf32>
    %37 = vector.shape_cast %36 : vector<1x1x128xf32> to vector<1x128xf32>
    %cst_19 = arith.constant 0.000000e+00 : f32
    %38 = vector.broadcast %cst_19 : f32 to vector<4x2x128xf32>
    %39 = arith.select %8, %35, %38 : vector<4x2x128xi1>, vector<4x2x128xf32>
    %cst_20 = arith.constant dense<0.000000e+00> : vector<128xf32>
    %40 = vector.multi_reduction <add>, %39, %cst_20 [0, 1] : vector<4x2x128xf32> to vector<128xf32>
    %41 = vector.shape_cast %40 : vector<128xf32> to vector<1x128xf32>
    %42 = arith.addf %37, %41 : vector<1x128xf32>
    %c0_21 = arith.constant 0 : index
    %c0_22 = arith.constant 0 : index
    %c0_23 = arith.constant 0 : index
    %43 = vector.load %arg4[%c0_21, %c0_22, %c0_23] : memref<1x6x128xf32, #tpu.memory_space<vmem>>, vector<1x1x128xf32>
    %44 = vector.shape_cast %43 : vector<1x1x128xf32> to vector<1x128xf32>
    %45 = vector.shape_cast %42 : vector<1x128xf32> to vector<1x1x128xf32>
    tpu.vector_store %arg4[%c0_21, %c0_22, %c0_23], %45 {strides = array<i32>} : memref<1x6x128xf32, #tpu.memory_space<vmem>>, vector<1x1x128xf32>,
    %c0_24 = arith.constant 0 : index
    %c3 = arith.constant 3 : index
    %c0_25 = arith.constant 0 : index
    %46 = vector.load %arg4[%c0_24, %c3, %c0_25] : memref<1x6x128xf32, #tpu.memory_space<vmem>>, vector<1x1x128xf32>
    %47 = vector.shape_cast %46 : vector<1x1x128xf32> to vector<1x128xf32>
    %48 = arith.extui %8 : vector<4x2x128xi1> to vector<4x2x128xi32>
    %49 = arith.sitofp %48 : vector<4x2x128xi32> to vector<4x2x128xf32>
    %cst_26 = arith.constant dense<0.000000e+00> : vector<128xf32>
    %50 = vector.multi_reduction <add>, %49, %cst_26 [0, 1] : vector<4x2x128xf32> to vector<128xf32>
    %51 = vector.shape_cast %50 : vector<128xf32> to vector<1x128xf32>
    %52 = arith.addf %47, %51 : vector<1x128xf32>
    %c0_27 = arith.constant 0 : index
    %c3_28 = arith.constant 3 : index
    %c0_29 = arith.constant 0 : index
    %53 = vector.load %arg4[%c0_27, %c3_28, %c0_29] : memref<1x6x128xf32, #tpu.memory_space<vmem>>, vector<1x1x128xf32>
    %54 = vector.shape_cast %53 : vector<1x1x128xf32> to vector<1x128xf32>
    %55 = vector.shape_cast %52 : vector<1x128xf32> to vector<1x1x128xf32>
    tpu.vector_store %arg4[%c0_27, %c3_28, %c0_29], %55 {strides = array<i32>} : memref<1x6x128xf32, #tpu.memory_space<vmem>>, vector<1x1x128xf32>,
    %c0_30 = arith.constant 0 : index
    %c1 = arith.constant 1 : index
    %c0_31 = arith.constant 0 : index
    %c0_32 = arith.constant 0 : index
    %56 = vector.load %arg3[%c0_30, %c1, %c0_31, %c0_32] : memref<4x5x2x128xf32, #tpu.memory_space<vmem>>, vector<4x1x2x128xf32>
    %57 = vector.shape_cast %56 : vector<4x1x2x128xf32> to vector<4x2x128xf32>
    %58 = arith.cmpf one, %57, %57 : vector<4x2x128xf32>
    %cst_33 = arith.constant dense<true> : vector<4x2x128xi1>
    %59 = arith.xori %58, %cst_33 : vector<4x2x128xi1>
    %cst_34 = arith.constant 0.000000e+00 : f32
    %60 = vector.broadcast %cst_34 : f32 to vector<4x2x128xf32>
    %61 = arith.select %59, %57, %60 : vector<4x2x128xi1>, vector<4x2x128xf32>
    %c0_35 = arith.constant 0 : index
    %c2 = arith.constant 2 : index
    %c0_36 = arith.constant 0 : index
    %c0_37 = arith.constant 0 : index
    %62 = vector.load %arg3[%c0_35, %c2, %c0_36, %c0_37] : memref<4x5x2x128xf32, #tpu.memory_space<vmem>>, vector<4x1x2x128xf32>
    %63 = vector.shape_cast %62 : vector<4x1x2x128xf32> to vector<4x2x128xf32>
    %cst_38 = arith.constant 0.000000e+00 : f32
    %64 = vector.broadcast %cst_38 : f32 to vector<4x2x128xf32>
    %65 = arith.select %59, %63, %64 : vector<4x2x128xi1>, vector<4x2x128xf32>
    %c0_39 = arith.constant 0 : index
    %c3_40 = arith.constant 3 : index
    %c0_41 = arith.constant 0 : index
    %c0_42 = arith.constant 0 : index
    %66 = vector.load %arg3[%c0_39, %c3_40, %c0_41, %c0_42] : memref<4x5x2x128xf32, #tpu.memory_space<vmem>>, vector<4x1x2x128xf32>
    %67 = vector.shape_cast %66 : vector<4x1x2x128xf32> to vector<4x2x128xf32>
    %cst_43 = arith.constant 0.000000e+00 : f32
    %68 = vector.broadcast %cst_43 : f32 to vector<4x2x128xf32>
    %69 = arith.select %59, %67, %68 : vector<4x2x128xi1>, vector<4x2x128xf32>
    %c0_44 = arith.constant 0 : index
    %c1_45 = arith.constant 1 : index
    %c0_46 = arith.constant 0 : index
    %c0_47 = arith.constant 0 : index
    %70 = vector.load %arg2[%c0_44, %c1_45, %c0_46, %c0_47] : memref<4x5x2x128xf32, #tpu.memory_space<vmem>>, vector<4x1x2x128xf32>
    %71 = vector.shape_cast %70 : vector<4x1x2x128xf32> to vector<4x2x128xf32>
    %c0_48 = arith.constant 0 : index
    %c2_49 = arith.constant 2 : index
    %c0_50 = arith.constant 0 : index
    %c0_51 = arith.constant 0 : index
    %72 = vector.load %arg2[%c0_48, %c2_49, %c0_50, %c0_51] : memref<4x5x2x128xf32, #tpu.memory_space<vmem>>, vector<4x1x2x128xf32>
    %73 = vector.shape_cast %72 : vector<4x1x2x128xf32> to vector<4x2x128xf32>
    %c0_52 = arith.constant 0 : index
    %c3_53 = arith.constant 3 : index
    %c0_54 = arith.constant 0 : index
    %c0_55 = arith.constant 0 : index
    %74 = vector.load %arg2[%c0_52, %c3_53, %c0_54, %c0_55] : memref<4x5x2x128xf32, #tpu.memory_space<vmem>>, vector<4x1x2x128xf32>
    %75 = vector.shape_cast %74 : vector<4x1x2x128xf32> to vector<4x2x128xf32>
    %76 = arith.subf %71, %61 : vector<4x2x128xf32>
    %77 = arith.mulf %76, %76 : vector<4x2x128xf32>
    %78 = arith.subf %73, %65 : vector<4x2x128xf32>
    %79 = arith.mulf %78, %78 : vector<4x2x128xf32>
    %80 = arith.addf %77, %79 : vector<4x2x128xf32>
    %81 = arith.mulf %69, %69 : vector<4x2x128xf32>
    %cst_56 = arith.constant 9.99999974E-5 : f32
    %82 = vector.broadcast %cst_56 : f32 to vector<4x2x128xf32>
    %83 = arith.maximumf %81, %82 : vector<4x2x128xf32>
    %84 = arith.addf %80, %83 : vector<4x2x128xf32>
    %85 = math.sqrt %84 : vector<4x2x128xf32>
    %cst_57 = arith.constant 0.000000e+00 : f32
    %86 = vector.broadcast %cst_57 : f32 to vector<4x2x128xf32>
    %87 = arith.maximumf %75, %86 : vector<4x2x128xf32>
    %88 = vector.broadcast %cst_57 : f32 to vector<4x2x128xf32>
    %89 = arith.subf %75, %88 : vector<4x2x128xf32>
    %90 = arith.cmpf one, %89, %89 : vector<4x2x128xf32>
    %91 = vector.broadcast %cst_57 : f32 to vector<4x2x128xf32>
    %92 = arith.addf %75, %91 : vector<4x2x128xf32>
    %93 = math.absf %89 : vector<4x2x128xf32>
    %cst_58 = arith.constant 0.000000e+00 : f32
    %94 = vector.broadcast %cst_58 : f32 to vector<4x2x128xf32>
    %95 = arith.subf %94, %93 : vector<4x2x128xf32>
    %96 = math.exp %95 : vector<4x2x128xf32>
    %97 = math.log1p %96 : vector<4x2x128xf32>
    %98 = arith.addf %87, %97 : vector<4x2x128xf32>
    %99 = arith.select %90, %92, %98 : vector<4x2x128xi1>, vector<4x2x128xf32>
    %100 = arith.maximumf %99, %69 : vector<4x2x128xf32>
    %101 = math.log %100 : vector<4x2x128xf32>
    %102 = arith.divf %85, %100 : vector<4x2x128xf32>
    %103 = arith.addf %101, %102 : vector<4x2x128xf32>
    %c0_59 = arith.constant 0 : index
    %c1_60 = arith.constant 1 : index
    %c0_61 = arith.constant 0 : index
    %104 = vector.load %arg4[%c0_59, %c1_60, %c0_61] : memref<1x6x128xf32, #tpu.memory_space<vmem>>, vector<1x1x128xf32>
    %105 = vector.shape_cast %104 : vector<1x1x128xf32> to vector<1x128xf32>
    %cst_62 = arith.constant 0.000000e+00 : f32
    %106 = vector.broadcast %cst_62 : f32 to vector<4x2x128xf32>
    %107 = arith.select %59, %103, %106 : vector<4x2x128xi1>, vector<4x2x128xf32>
    %cst_63 = arith.constant dense<0.000000e+00> : vector<128xf32>
    %108 = vector.multi_reduction <add>, %107, %cst_63 [0, 1] : vector<4x2x128xf32> to vector<128xf32>
    %109 = vector.shape_cast %108 : vector<128xf32> to vector<1x128xf32>
    %110 = arith.addf %105, %109 : vector<1x128xf32>
    %c0_64 = arith.constant 0 : index
    %c1_65 = arith.constant 1 : index
    %c0_66 = arith.constant 0 : index
    %111 = vector.load %arg4[%c0_64, %c1_65, %c0_66] : memref<1x6x128xf32, #tpu.memory_space<vmem>>, vector<1x1x128xf32>
    %112 = vector.shape_cast %111 : vector<1x1x128xf32> to vector<1x128xf32>
    %113 = vector.shape_cast %110 : vector<1x128xf32> to vector<1x1x128xf32>
    tpu.vector_store %arg4[%c0_64, %c1_65, %c0_66], %113 {strides = array<i32>} : memref<1x6x128xf32, #tpu.memory_space<vmem>>, vector<1x1x128xf32>,
    %c0_67 = arith.constant 0 : index
    %c4 = arith.constant 4 : index
    %c0_68 = arith.constant 0 : index
    %114 = vector.load %arg4[%c0_67, %c4, %c0_68] : memref<1x6x128xf32, #tpu.memory_space<vmem>>, vector<1x1x128xf32>
    %115 = vector.shape_cast %114 : vector<1x1x128xf32> to vector<1x128xf32>
    %116 = arith.extui %59 : vector<4x2x128xi1> to vector<4x2x128xi32>
    %117 = arith.sitofp %116 : vector<4x2x128xi32> to vector<4x2x128xf32>
    %cst_69 = arith.constant dense<0.000000e+00> : vector<128xf32>
    %118 = vector.multi_reduction <add>, %117, %cst_69 [0, 1] : vector<4x2x128xf32> to vector<128xf32>
    %119 = vector.shape_cast %118 : vector<128xf32> to vector<1x128xf32>
    %120 = arith.addf %115, %119 : vector<1x128xf32>
    %c0_70 = arith.constant 0 : index
    %c4_71 = arith.constant 4 : index
    %c0_72 = arith.constant 0 : index
    %121 = vector.load %arg4[%c0_70, %c4_71, %c0_72] : memref<1x6x128xf32, #tpu.memory_space<vmem>>, vector<1x1x128xf32>
    %122 = vector.shape_cast %121 : vector<1x1x128xf32> to vector<1x128xf32>
    %123 = vector.shape_cast %120 : vector<1x128xf32> to vector<1x1x128xf32>
    tpu.vector_store %arg4[%c0_70, %c4_71, %c0_72], %123 {strides = array<i32>} : memref<1x6x128xf32, #tpu.memory_space<vmem>>, vector<1x1x128xf32>,
    %c0_73 = arith.constant 0 : index
    %c4_74 = arith.constant 4 : index
    %c0_75 = arith.constant 0 : index
    %c0_76 = arith.constant 0 : index
    %124 = vector.load %arg3[%c0_73, %c4_74, %c0_75, %c0_76] : memref<4x5x2x128xf32, #tpu.memory_space<vmem>>, vector<4x1x2x128xf32>
    %125 = vector.shape_cast %124 : vector<4x1x2x128xf32> to vector<4x2x128xf32>
    %126 = arith.cmpf one, %125, %125 : vector<4x2x128xf32>
    %cst_77 = arith.constant dense<true> : vector<4x2x128xi1>
    %127 = arith.xori %126, %cst_77 : vector<4x2x128xi1>
    %cst_78 = arith.constant 1.000000e+00 : f32
    %128 = vector.broadcast %cst_78 : f32 to vector<4x2x128xf32>
    %129 = arith.select %127, %125, %128 : vector<4x2x128xi1>, vector<4x2x128xf32>
    %c0_79 = arith.constant 0 : index
    %c4_80 = arith.constant 4 : index
    %c0_81 = arith.constant 0 : index
    %c0_82 = arith.constant 0 : index
    %130 = vector.load %arg2[%c0_79, %c4_80, %c0_81, %c0_82] : memref<4x5x2x128xf32, #tpu.memory_space<vmem>>, vector<4x1x2x128xf32>
    %131 = vector.shape_cast %130 : vector<4x1x2x128xf32> to vector<4x2x128xf32>
    %cst_83 = arith.constant 0.000000e+00 : f32
    %132 = vector.broadcast %cst_83 : f32 to vector<4x2x128xf32>
    %133 = arith.maximumf %131, %132 : vector<4x2x128xf32>
    %134 = vector.broadcast %cst_83 : f32 to vector<4x2x128xf32>
    %135 = arith.subf %131, %134 : vector<4x2x128xf32>
    %136 = arith.cmpf one, %135, %135 : vector<4x2x128xf32>
    %137 = vector.broadcast %cst_83 : f32 to vector<4x2x128xf32>
    %138 = arith.addf %131, %137 : vector<4x2x128xf32>
    %139 = math.absf %135 : vector<4x2x128xf32>
    %cst_84 = arith.constant 0.000000e+00 : f32
    %140 = vector.broadcast %cst_84 : f32 to vector<4x2x128xf32>
    %141 = arith.subf %140, %139 : vector<4x2x128xf32>
    %142 = math.exp %141 : vector<4x2x128xf32>
    %143 = math.log1p %142 : vector<4x2x128xf32>
    %144 = arith.addf %133, %143 : vector<4x2x128xf32>
    %145 = arith.select %136, %138, %144 : vector<4x2x128xi1>, vector<4x2x128xf32>
    %146 = arith.subf %145, %129 : vector<4x2x128xf32>
    %147 = math.absf %146 : vector<4x2x128xf32>
    %cst_85 = arith.constant 1.000000e+00 : f32
    %148 = vector.broadcast %cst_85 : f32 to vector<4x2x128xf32>
    %149 = arith.mulf %147, %148 : vector<4x2x128xf32>
    %cst_86 = arith.constant 1.000000e-01 : f32
    %150 = vector.broadcast %cst_86 : f32 to vector<4x2x128xf32>
    %151 = arith.addf %150, %129 : vector<4x2x128xf32>
    %152 = tpu.reciprocal %151 {approx = true} : vector<4x2x128xf32> -> vector<4x2x128xf32>
    %153 = arith.mulf %149, %152 : vector<4x2x128xf32>
    %c0_87 = arith.constant 0 : index
    %c2_88 = arith.constant 2 : index
    %c0_89 = arith.constant 0 : index
    %154 = vector.load %arg4[%c0_87, %c2_88, %c0_89] : memref<1x6x128xf32, #tpu.memory_space<vmem>>, vector<1x1x128xf32>
    %155 = vector.shape_cast %154 : vector<1x1x128xf32> to vector<1x128xf32>
    %cst_90 = arith.constant 0.000000e+00 : f32
    %156 = vector.broadcast %cst_90 : f32 to vector<4x2x128xf32>
    %157 = arith.select %127, %153, %156 : vector<4x2x128xi1>, vector<4x2x128xf32>
    %cst_91 = arith.constant dense<0.000000e+00> : vector<128xf32>
    %158 = vector.multi_reduction <add>, %157, %cst_91 [0, 1] : vector<4x2x128xf32> to vector<128xf32>
    %159 = vector.shape_cast %158 : vector<128xf32> to vector<1x128xf32>
    %160 = arith.addf %155, %159 : vector<1x128xf32>
    %c0_92 = arith.constant 0 : index
    %c2_93 = arith.constant 2 : index
    %c0_94 = arith.constant 0 : index
    %161 = vector.load %arg4[%c0_92, %c2_93, %c0_94] : memref<1x6x128xf32, #tpu.memory_space<vmem>>, vector<1x1x128xf32>
    %162 = vector.shape_cast %161 : vector<1x1x128xf32> to vector<1x128xf32>
    %163 = vector.shape_cast %160 : vector<1x128xf32> to vector<1x1x128xf32>
    tpu.vector_store %arg4[%c0_92, %c2_93, %c0_94], %163 {strides = array<i32>} : memref<1x6x128xf32, #tpu.memory_space<vmem>>, vector<1x1x128xf32>,
    %c0_95 = arith.constant 0 : index
    %c5 = arith.constant 5 : index
    %c0_96 = arith.constant 0 : index
    %164 = vector.load %arg4[%c0_95, %c5, %c0_96] : memref<1x6x128xf32, #tpu.memory_space<vmem>>, vector<1x1x128xf32>
    %165 = vector.shape_cast %164 : vector<1x1x128xf32> to vector<1x128xf32>
    %166 = arith.extui %127 : vector<4x2x128xi1> to vector<4x2x128xi32>
    %167 = arith.sitofp %166 : vector<4x2x128xi32> to vector<4x2x128xf32>
    %cst_97 = arith.constant dense<0.000000e+00> : vector<128xf32>
    %168 = vector.multi_reduction <add>, %167, %cst_97 [0, 1] : vector<4x2x128xf32> to vector<128xf32>
    %169 = vector.shape_cast %168 : vector<128xf32> to vector<1x128xf32>
    %170 = arith.addf %165, %169 : vector<1x128xf32>
    %c0_98 = arith.constant 0 : index
    %c5_99 = arith.constant 5 : index
    %c0_100 = arith.constant 0 : index
    %171 = vector.load %arg4[%c0_98, %c5_99, %c0_100] : memref<1x6x128xf32, #tpu.memory_space<vmem>>, vector<1x1x128xf32>
    %172 = vector.shape_cast %171 : vector<1x1x128xf32> to vector<1x128xf32>
    %173 = vector.shape_cast %170 : vector<1x128xf32> to vector<1x1x128xf32>
    tpu.vector_store %arg4[%c0_98, %c5_99, %c0_100], %173 {strides = array<i32>} : memref<1x6x128xf32, #tpu.memory_space<vmem>>, vector<1x1x128xf32>,
    return
  }
  func.func @transform_0(%arg0: i32, %arg1: i32) -> (i32, i32, i32, i32) {
    %c0_i32 = arith.constant 0 : i32
    %c0_i32_0 = arith.constant 0 : i32
    %c0_i32_1 = arith.constant 0 : i32
    return %arg0, %c0_i32, %arg1, %c0_i32_0 : i32, i32, i32, i32
  }
  func.func @transform_1(%arg0: i32, %arg1: i32) -> (i32, i32, i32, i32) {
    %c0_i32 = arith.constant 0 : i32
    %c0_i32_0 = arith.constant 0 : i32
    %c0_i32_1 = arith.constant 0 : i32
    return %arg0, %c0_i32, %arg1, %c0_i32_0 : i32, i32, i32, i32
  }
  func.func @transform_2(%arg0: i32, %arg1: i32) -> (i32, i32, i32) {
    %c0_i32 = arith.constant 0 : i32
    %c0_i32_0 = arith.constant 0 : i32
    %c0_i32_1 = arith.constant 0 : i32
    return %arg0, %c0_i32, %c0_i32_0 : i32, i32, i32
  }
}

</mosaic_0001>

<bundles_post_ra>
// kernel: composite_loss_sums.1
= control target key start
LH: loop header
LB: loop body
LE: loop exit
PB: predicated region body
PF: predicated region fallthrough
CT: control target
= control target key end

     0   :  { %s1165_s9 = smov 0   ;;  %s1167_s10 = smov 0   ;;  %s1976_s0 = inlined_call_operand.vmem [shape: f32[8,5,2,128], index: 0, kind: input, shape index: {}]   ;;  %s1977_s1 = inlined_call_operand.vmem [shape: f32[8,5,2,128], index: 1, kind: input, shape index: {}]   ;;  %s1978_s2 = inlined_call_operand.vmem [shape: f32[2,6,128], index: 2, kind: output, shape index: {}]  }
   0x1   :  { %s1169_s11 = smov 0  }
   0x2 LB: > { %s24_s12 = sadd.s32 1, %s1142_s10  ;;  %p957_p0 = scmp.ge.s32.totalorder %s1146_s11, 1  ;;  %s1146_s11 = sphi %s1169_s11, %s12_s11   ;;  %s1142_s10 = sphi %s1167_s10, %s2086_s10   ;;  %s1138_s9 = sphi %s1165_s9, %s2085_s9  }
   0x3   : > { %p26_p1 = scmp.ge.s32.totalorder %s24_s12, 2  ;;  %p148_p2 = scmp.lt.s32.totalorder %s1146_s11, 3 }
   0x5   : > { %s2088_s12 = smov (%p26_p1, %s24_s12), 0  ;;  %p149_p3 = pnand %p957_p0, %p148_p2 }
   0x6   : > { %s958_s13 = sshll.u32 (!%p149_p3), %s1138_s9, 2  ;;  %p202_p4 = scmp.lt.s32.totalorder (!%p149_p3), %s1138_s9, 1 }
   0x7   : > { %152 = sbr.rel (%p149_p3) target bundleno = 181 (0xb5), region = 28  ;;  %p183_p5 = scmp.lt.s32.totalorder (!%p149_p3), %s958_s13, 7 }
   0xc   : > { %s2090_s9 = smov (!%p202_p4, %s1138_s9), 1  ;;  %s2092_s13 = smov (!%p183_p5, %s958_s13), 7  ;;  %v1986_v0 = vmov 0.0   ;;  %vm1149_vm4 = vmmov 1   ;;  %v2005_v57 = vmov 0 }
   0xd   : > { %s962_s14 = sshll.u32 %s2090_s9, 3  ;;  %s1009_s15 = smul.u32 10, %s2092_s13 }
   0xe   : > { %s1186_s18 = scalar_lea.vmem %s1978_s2, %s962_s14 }
   0xf   : > { %210 = vst [vmem:[%s1186_s18] sm:$0x3f] %v1986_v0  ;;  %s1193_s21 = scalar_lea.vmem %s1976_s0, %s1009_s15  ;;  %s1198_s24 = scalar_lea.vmem %s1977_s1, %s1009_s15 }
  0x10   : > { %v1201_v1 = vld [vmem:[%s1193_s21] sm:$0x3]  ;;  %v1204_v2 = vld [vmem:[%s1193_s21 + $0xa] sm:$0x3]  ;;  %v1209_v5 = vld [vmem:[%s1193_s21 + $0x14] sm:$0x3] }
  0x11   : > { %v215_v3 = vld [vmem:[%s1198_s24] sm:$0x3]  ;;  %v216_v4 = vld [vmem:[%s1198_s24 + $0xa] sm:$0x3]  ;;  %v217_v6 = vld [vmem:[%s1198_s24 + $0x14] sm:$0x3] }
  0x12   : > { %v218_v7 = vld [vmem:[%s1198_s24 + $0x1e] sm:$0x3]  ;;  %vm219_vm0 = vcmp.ne.f32.partialorder %v215_v3, %v215_v3  ;;  %vm220_vm1 = vcmp.ne.f32.partialorder %v216_v4, %v216_v4  ;;  %vm221_vm2 = vcmp.ne.f32.partialorder %v217_v6, %v217_v6  ;;  %v239_v10 = vmax.f32 %v1201_v1, 0.0  ;;  %v1223_v11 = vld [vmem:[%s1198_s24 + $0x2] sm:$0x3] }
  0x13   : > { %v1214_v8 = vld [vmem:[%s1193_s21 + $0x1e] sm:$0x3]  ;;  %vm222_vm3 = vcmp.ne.f32.partialorder %v218_v7, %v218_v7  ;;  %vm1217_vm5 = vmxor %vm219_vm0, %vm1149_vm4  ;;  %v240_v14 = vmax.f32 %v1204_v2, 0.0  ;;  %v251_v15 = vand.u32 2147483647, %v1201_v1  ;;  %v241_v19 = vmax.f32 %v1209_v5, 0.0 }
  0x14   : > { %vm1226_vm6 = vmxor %vm220_vm1, %vm1149_vm4  ;;  %v1232_v13 = vsel %vm1217_vm5, %v215_v3, 0.0  ;;  %v252_v16 = vand.u32 2147483647, %v1204_v2  ;;  %v253_v20 = vand.u32 2147483647, %v1209_v5  ;;  %vm393_vm12 = vcmp.ne.f32.partialorder %v1223_v11, %v1223_v11 }
  0x15   : > { %vm1238_vm7 = vmxor %vm221_vm2, %vm1149_vm4  ;;  %v1244_v18 = vsel %vm1226_vm6, %v216_v4, 0.0  ;;  %vm231_vm8 = vcmp.gt.f32.partialorder %v1232_v13, 0.0  ;;  %v254_v23 = vand.u32 2147483647, %v1214_v8  ;;  %v255_v24 = vsub.f32 0.0, %v251_v15 }
  0x16   : > { %vm1251_vm9 = vmxor %vm222_vm3, %vm1149_vm4  ;;  %v1257_v22 = vsel %vm1238_vm7, %v217_v6, 0.0  ;;  %vm232_vm10 = vcmp.gt.f32.partialorder %v1244_v18, 0.0  ;;  %v1267_v26 = vsel %vm231_vm8, 1.0, %v1232_v13  ;;  %v242_v28 = vmax.f32 %v1214_v8, 0.0  ;;  %v968_v30 = vld [vmem:[%s1198_s24 + $0xc] sm:$0x3] }
  0x17   : > { %v1263_v25 = vsel %vm1251_vm9, %v218_v7, 0.0  ;;  %vm233_vm11 = vcmp.gt.f32.partialorder %v1257_v22, 0.0  ;;  %v1273_v27 = vsel %vm232_vm10, 1.0, %v1244_v18  ;;  %v256_v29 = vsub.f32 0.0, %v252_v16  ;;  %v969_v33 = vld [vmem:[%s1198_s24 + $0x16] sm:$0x3]  ;;  %vm1288_vm14 = vmxor %vm393_vm12, %vm1149_vm4 }
  0x18   : > { %vm234_vm13 = vcmp.gt.f32.partialorder %v1263_v25, 0.0  ;;  %v1278_v31 = vsel %vm233_vm11, 1.0, %v1257_v22  ;;  %v257_v32 = vsub.f32 0.0, %v253_v20  ;;  %v970_v34 = vld [vmem:[%s1198_s24 + $0x20] sm:$0x3]  ;;  %v243_v36 = vmul.f32 %v1267_v26, %v1201_v1 }
  0x19   : > { %v1283_v35 = vsel %vm234_vm13, 1.0, %v1263_v25  ;;  %v258_v37 = vsub.f32 0.0, %v254_v23  ;;  %v259_v38 = vmul.f32 1.442695, %v255_v24  ;;  %v971_v40 = vld [vmem:[%s1198_s24 + $0x4] sm:$0x3]  ;;  %v244_v42 = vmul.f32 %v1273_v27, %v1204_v2 }
  0x1a   : > { %v972_v41 = vld [vmem:[%s1198_s24 + $0xe] sm:$0x3]  ;;  %v261_v43 = vmul.f32 1.442695, %v256_v29  ;;  %v263_v44 = vmul.f32 1.442695, %v257_v32  ;;  %vm394_vm15 = vcmp.ne.f32.partialorder %v968_v30, %v968_v30  ;;  %v245_v46 = vmul.f32 %v1278_v31, %v1209_v5 }
  0x1b   : > { %v1297_v45 = vld [vmem:[%s1198_s24 + $0x18] sm:$0x3]  ;;  %1036 = vpow2.f32 %v259_v38  ;;  %v265_v47 = vmul.f32 1.442695, %v258_v37  ;;  %vm395_vm0 = vcmp.ne.f32.partialorder %v969_v33, %v969_v33  ;;  %vm1302_vm1 = vmxor %vm394_vm15, %vm1149_vm4  ;;  %v1307_v49 = vld [vmem:[%s1198_s24 + $0x22] sm:$0x3]  ;;  %v246_v51 = vmul.f32 %v1283_v35, %v1214_v8 }
  0x1c   : > { %v975_v50 = vld [vmem:[%s1198_s24 + $0x6] sm:$0x3]  ;;  %1038 = vpow2.f32 %v261_v43  ;;  %vm396_vm2 = vcmp.ne.f32.partialorder %v970_v34, %v970_v34  ;;  %vm1313_vm3 = vmxor %vm395_vm0, %vm1149_vm4  ;;  %v401_v53 = vsel %vm1288_vm14, %v1223_v11, 0.0  ;;  %v976_v54 = vld [vmem:[%s1198_s24 + $0x10] sm:$0x3]  ;;  %v1322_v56 = vsub.f32 %v239_v10, %v243_v36 }
  0x1d   : > { %v977_v55 = vld [vmem:[%s1198_s24 + $0x1a] sm:$0x3]  ;;  %1040 = vpow2.f32 %v263_v44  ;;  %vm1325_vm8 = vmxor %vm396_vm2, %vm1149_vm4  ;;  %v402_v58 = vsel %vm1302_vm1, %v968_v30, 0.0  ;;  %v403_v59 = vsel %vm1313_vm3, %v969_v33, 0.0  ;;  %v978_v60 = vld [vmem:[%s1198_s24 + $0x24] sm:$0x3]  ;;  %v1335_v62 = vsub.f32 %v240_v14, %v244_v42 }
  0x1e   : > { %v2006_v57 = vsel %vm1325_vm8, 4294967295, %v2005_v57  ;;  %v979_v61 = vld [vmem:[%s1193_s21 + $0x2] sm:$0x3]  ;;  %1042 = vpow2.f32 %v265_v47  ;;  %v410_v63 = vsel %vm1288_vm14, %v971_v40, 0.0  ;;  %v411_v1 = vsel %vm1302_vm1, %v972_v41, 0.0 }
  0x1f   : > { %v980_v2 = vld [vmem:[%s1193_s21 + $0xc] sm:$0x3]  ;;  %v981_v3 = vld [vmem:[%s1193_s21 + $0x16] sm:$0x3]  ;;  %v404_v4 = vsel %vm1325_vm8, %v970_v34, 0.0  ;;  %v412_v6 = vsel %vm1313_vm3, %v1297_v45, 0.0  ;;  %v1358_v11 = vsub.f32 %v241_v19, %v245_v46  ;;  %v1360_v14 = vsub.f32 %v242_v28, %v246_v51 }
  0x20   : > { %v413_v7 = vsel %vm1325_vm8, %v1307_v49, 0.0  ;;  %v1353_v8 = vsel %vm1288_vm14, %v975_v50, 0.0  ;;  %v982_v10 = vld [vmem:[%s1193_s21 + $0x20] sm:$0x3]  ;;  %v1364_v15 = vsel %vm1302_vm1, %v976_v54, 0.0  ;;  %v1368_v16 = vsel %vm1313_vm3, %v977_v55, 0.0 }
  0x21   : > { %v983_v20 = vld [vmem:[%s1193_s21 + $0x4] sm:$0x3]  ;;  %v984_v23 = vld [vmem:[%s1193_s21 + $0xe] sm:$0x3]  ;;  %v1037_v24 = vpop.eup %1036  ;;  %v1374_v29 = vsel %vm1325_vm8, %v978_v60, 0.0  ;;  %v438_v5 = vsub.f32 %v979_v61, %v401_v53  ;;  %v439_v19 = vsub.f32 %v980_v2, %v402_v58  ;;  %v440_v30 = vsub.f32 %v981_v3, %v403_v59 }
  0x22   : > { %v1039_v28 = vpop.eup %1038  ;;  %v267_v32 = vadd.f32 1.0, %v1037_v24  ;;  %v270_v33 = vmul.f32 -0.5, %v1037_v24  ;;  %v985_v34 = vld [vmem:[%s1193_s21 + $0x18] sm:$0x3]  ;;  %v1377_v36 = vsub.f32 %v982_v10, %v404_v4  ;;  %v1379_v37 = vsub.f32 %v983_v20, %v410_v63 }
  0x23   : > { %v1041_v38 = vpop.eup %1040  ;;  %v273_v40 = vand.u32 2147483647, %v1037_v24  ;;  %v276_v41 = vadd.f32 1.0, %v1039_v28  ;;  %v279_v42 = vmul.f32 -0.5, %v1039_v28  ;;  %v447_v43 = vsub.f32 %v984_v23, %v411_v1 }
  0x24   : > { %v1043_v44 = vpop.eup %1042  ;;  %1044 = vlog2.f32 %v267_v32  ;;  %v271_v45 = vadd.f32 1.0, %v270_v33  ;;  %v282_v46 = vand.u32 2147483647, %v1039_v28  ;;  %v285_v47 = vadd.f32 1.0, %v1041_v38 }
  0x25   : > { %1046 = vlog2.f32 %v276_v41  ;;  %v280_v50 = vadd.f32 1.0, %v279_v42  ;;  %v288_v51 = vmul.f32 -0.5, %v1041_v38  ;;  %v448_v53 = vsub.f32 %v985_v34, %v412_v6 }
  0x26   : > { %1048 = vlog2.f32 %v285_v47  ;;  %v291_v54 = vand.u32 2147483647, %v1041_v38  ;;  %v294_v55 = vadd.f32 1.0, %v1043_v44  ;;  %v1383_v58 = vmul.f32 %v1353_v8, %v1353_v8 }
  0x27   : > { %v289_v59 = vadd.f32 1.0, %v288_v51  ;;  %v297_v60 = vmul.f32 -0.5, %v1043_v44  ;;  %v300_v61 = vand.u32 2147483647, %v1043_v44  ;;  %v442_v63 = vmul.f32 %v438_v5, %v438_v5 }
  0x28   : > { %v272_v1 = vmul.f32 %v1037_v24, %v271_v45  ;;  %vm1385_vm10 = vcmp.lt.f32.partialorder %v273_v40, 0.0004427343  ;;  %vm1389_vm11 = vcmp.lt.f32.partialorder %v282_v46, 0.0004427343  ;;  %1050 = vlog2.f32 %v294_v55 }
  0x29   : > { %v281_v4 = vmul.f32 %v1039_v28, %v280_v50  ;;  %v290_v6 = vmul.f32 %v1041_v38, %v289_v59  ;;  %vm1393_vm12 = vcmp.lt.f32.partialorder %v291_v54, 0.0004427343  ;;  %v298_v20 = vadd.f32 1.0, %v297_v60  ;;  %v986_v59 = vld [vmem:[%s1193_s21 + $0x22] sm:$0x3] }
  0x2a   : > { %v1045_v23 = vpop.eup %1044  ;;  %vm1979_vm13 = vcmask 1041408   ;;  %v963_v24 = vsel %vm1217_vm5, 1.0, %v1986_v0  ;;  %v964_v5 = vsel %vm1226_vm6, 1.0, %v1986_v0  ;;  %v965_v28 = vsel %vm1238_vm7, 1.0, %v1986_v0 }
  0x2b   : > { %v1047_v32 = vpop.eup %1046  ;;  %v269_v33 = vmul.f32 0.6931472, %v1045_v23  ;;  %vm1406_vm15 = vcmp.lt.f32.partialorder %v300_v61, 0.0004427343  ;;  %v966_v38 = vsel %vm1251_vm9, 1.0, %v1986_v0  ;;  %v373_v40 = vsel %vm1979_vm13, %v963_v24, 0.0 }
  0x2c   : > { %v1049_v41 = vpop.eup %1048  ;;  %v278_v42 = vmul.f32 0.6931472, %v1047_v32  ;;  %v299_v45 = vmul.f32 %v1043_v44, %v298_v20  ;;  %v374_v46 = vsel %vm1979_vm13, %v964_v5, 0.0  ;;  %v376_v47 = vsel %vm1979_vm13, %v965_v28, 0.0 }
  0x2d   : > { %v275_v50 = vsel %vm1385_vm10, %v272_v1, %v269_v33  ;;  %v287_v51 = vmul.f32 0.6931472, %v1049_v41  ;;  %v375_v54 = vadd.f32 %v374_v46, %v373_v40  ;;  %v378_v55 = vsel %vm1979_vm13, %v966_v38, 0.0 }
  0x2e   : > { %v1051_v60 = vpop.eup %1050  ;;  %v284_v61 = vsel %vm1389_vm11, %v281_v4, %v278_v42  ;;  %v1423_v23 = vadd.f32 %v275_v50, %v1322_v56  ;;  %v443_v44 = vmul.f32 %v439_v19, %v439_v19  ;;  %v444_v20 = vmul.f32 %v440_v30, %v440_v30 }
  0x2f   : > { %v293_v24 = vsel %vm1393_vm12, %v290_v6, %v287_v51  ;;  %v296_v5 = vmul.f32 0.6931472, %v1051_v60  ;;  %v1428_v1 = vadd.f32 %v284_v61, %v1335_v62  ;;  %v377_v2 = vadd.f32 %v376_v47, %v375_v54 }
  0x30   : > { %v1431_v28 = vadd.f32 %v293_v24, %v1358_v11  ;;  %v307_v32 = vmax.f32 %v1423_v23, 0.02  ;;  %v449_v56 = vsub.f32 %v986_v59, %v413_v7  ;;  %v450_v19 = vmul.f32 %v1379_v37, %v1379_v37 }
  0x31   : > { %v302_v30 = vsel %vm1406_vm15, %v299_v45, %v296_v5  ;;  %v308_v62 = vmax.f32 %v1428_v1, 0.02  ;;  %v379_v3 = vadd.f32 %v378_v55, %v377_v2  ;;  %v451_v4 = vmul.f32 %v447_v43, %v447_v43 }
  0x32   : > { %v1444_v11 = vadd.f32 %v302_v30, %v1360_v14  ;;  %v309_v6 = vmax.f32 %v1431_v28, 0.02  ;;  %v311_v10 = vsub.f32 0.0, %v307_v32  ;;  %v452_v33 = vmul.f32 %v448_v53, %v448_v53  ;;  %v364_v28 = vld [vmem:[%s1186_s18 + $0x3] sm:$0x1] }
  0x33   : > { %v312_v38 = vsub.f32 0.0, %v308_v62  ;;  %v380_v49 = vrot.slane %v379_v3, 4  ;;  %v445_v7 = vmul.f32 %v1377_v36, %v1377_v36  ;;  %v453_v37 = vmul.f32 %v449_v56, %v449_v56 }
  0x34   : > { %v310_v34 = vmax.f32 %v1444_v11, 0.02  ;;  %v313_v40 = vsub.f32 0.0, %v309_v6  ;;  %v315_v41 = vmul.f32 1.442695, %v311_v10  ;;  %v454_v42 = vadd.f32 %v450_v19, %v442_v63 }
  0x35   : > { %v317_v45 = vmul.f32 1.442695, %v312_v38  ;;  %v381_v43 = vadd.f32 %v380_v49, %v379_v3  ;;  %v455_v46 = vadd.f32 %v451_v4, %v443_v44  ;;  %v456_v14 = vadd.f32 %v452_v33, %v444_v20 }
  0x36   : > { %v314_v47 = vsub.f32 0.0, %v310_v34  ;;  %1052 = vpow2.f32 %v315_v41  ;;  %v319_v50 = vmul.f32 1.442695, %v313_v40  ;;  %v459_v53 = vmul.f32 %v1364_v15, %v1364_v15 }
  0x37   : > { %1054 = vpow2.f32 %v317_v45  ;;  %v382_v51 = vrot.slane %v381_v43, 2  ;;  %v460_v36 = vmul.f32 %v1368_v16, %v1368_v16  ;;  %v461_v54 = vmul.f32 %v1374_v29, %v1374_v29 }
  0x38   : > { %1056 = vpow2.f32 %v319_v50  ;;  %v321_v63 = vmul.f32 1.442695, %v314_v47  ;;  %v457_v55 = vadd.f32 %v453_v37, %v445_v7  ;;  %v462_v59 = vmax.f32 %v1383_v58, 0.0001 }
  0x39   : > { %v383_v60 = vadd.f32 %v382_v51, %v381_v43  ;;  %v463_v61 = vmax.f32 %v459_v53, 0.0001  ;;  %v464_v23 = vmax.f32 %v460_v36, 0.0001  ;;  %v465_v44 = vmax.f32 %v461_v54, 0.0001 }
  0x3a   : > { %1058 = vpow2.f32 %v321_v63  ;;  %v1457_v20 = vadd.f32 %v462_v59, %v454_v42  ;;  %vm331_vm0 = vcmp.ne.f32.partialorder %v1267_v26, %v1232_v13  ;;  %vm332_vm2 = vcmp.ne.f32.partialorder %v1273_v27, %v1244_v18  ;;  %v1498_v54 = vld [vmem:[%s1193_s21 + $0x6] sm:$0x3] }
  0x3b   : > { %v384_v24 = vrot.slane %v383_v60, 1  ;;  %v1459_v5 = vadd.f32 %v463_v61, %v455_v46  ;;  %v1461_v1 = vadd.f32 %v464_v23, %v456_v14  ;;  %v1464_v56 = vadd.f32 %v465_v44, %v457_v55  ;;  %v1503_v61 = vld [vmem:[%s1193_s21 + $0x10] sm:$0x3]  ;;  %v1506_v23 = vld [vmem:[%s1193_s21 + $0x1a] sm:$0x3] }
  0x3c   : > { %v1053_v2 = vpop.eup %1052  ;;  %1060 = vrsqrt.f32 %v1457_v20  ;;  %vm333_vm10 = vcmp.ne.f32.partialorder %v1278_v31, %v1257_v22  ;;  %vm334_vm11 = vcmp.ne.f32.partialorder %v1283_v35, %v1263_v25 }
  0x3d   : > { %v1055_v19 = vpop.eup %1054  ;;  %v323_v58 = vsub.f32 1.0, %v1053_v2  ;;  %v385_v30 = vadd.f32 %v384_v24, %v383_v60  ;;  %1062 = vrsqrt.f32 %v1459_v5  ;;  %v1509_v24 = vld [vmem:[%s1193_s21 + $0x24] sm:$0x3]  ;;  %vm501_vm12 = vcmp.eq.f32.partialorder %v1461_v1, inf }
  0x3e   : > { %v1057_v3 = vpop.eup %1056  ;;  %v324_v4 = vsub.f32 1.0, %v1055_v19  ;;  %1064 = vrsqrt.f32 %v1461_v1  ;;  %v518_v19 = vmax.f32 %v1498_v54, 0.0  ;;  %vm503_vm15 = vcmp.eq.f32.partialorder %v1461_v1, 0.0 }
  0x3f   : > { %v325_v11 = vsub.f32 1.0, %v1057_v3  ;;  %v327_v10 = vmul.f32 %v323_v58, %v307_v32  ;;  %v386_v33 = vadd.f32 %v385_v30, %v364_v28  ;;  %1066 = vrsqrt.f32 %v1464_v56 }
  0x40   : > { %v1059_v38 = vpop.eup %1058  ;;  %v328_v49 = vmul.f32 %v324_v4, %v308_v62  ;;  %v519_v3 = vmax.f32 %v1503_v61, 0.0  ;;  %v530_v4 = vand.u32 2147483647, %v1498_v54 }
  0x41   : > { %v326_v7 = vsub.f32 1.0, %v1059_v38  ;;  %v329_v37 = vmul.f32 %v325_v11, %v309_v6  ;;  %v335_v40 = vmul.f32 %v327_v10, %v1232_v13  ;;  %387 = vst [vmem:[%s1186_s18 + $0x3] sm:$0x1] %v386_v33  ;;  %v531_v38 = vand.u32 2147483647, %v1503_v61 }
  0x42   : > { %v1061_v41 = vpop.eup %1060  ;;  %v336_v32 = vmul.f32 %v328_v49, %v1244_v18 }
  0x43   : > { %v1063_v62 = vpop.eup %1062  ;;  %v330_v42 = vmul.f32 %v326_v7, %v310_v34  ;;  %v337_v26 = vmul.f32 %v329_v37, %v1257_v22  ;;  %v339_v45 = vsel %vm331_vm0, %v335_v40, %v327_v10  ;;  %v471_v43 = vmul.f32 %v1061_v41, %v1457_v20 }
  0x44   : > { %v1065_v6 = vpop.eup %1064  ;;  %v340_v27 = vsel %vm332_vm2, %v336_v32, %v328_v49  ;;  %v344_v13 = vsel %vm1217_vm5, %v339_v45, 0.0  ;;  %v483_v31 = vmul.f32 %v1063_v62, %v1459_v5  ;;  %v533_v40 = vand.u32 2147483647, %v1509_v24 }
  0x45   : > { %v338_v18 = vmul.f32 %v330_v42, %v1263_v25  ;;  %v341_v46 = vsel %vm333_vm10, %v337_v26, %v329_v37  ;;  %v345_v22 = vsel %vm1226_vm6, %v340_v27, 0.0  ;;  %v349_v34 = vsel %vm1979_vm13, %v344_v13, 0.0  ;;  %v1067_v14 = vpop.eup %1066 }
  0x46   : > { %v346_v35 = vsel %vm1238_vm7, %v341_v46, 0.0  ;;  %v350_v9 = vsel %vm1979_vm13, %v345_v22, 0.0  ;;  %v472_v47 = vmul.f32 %v1061_v41, %v471_v43  ;;  %v484_v50 = vmul.f32 %v1063_v62, %v483_v31  ;;  %v1524_v31 = vld [vmem:[%s1193_s21 + $0x8] sm:$0x3] }
  0x47   : > { %v342_v53 = vsel %vm334_vm11, %v338_v18, %v330_v42  ;;  %v351_v51 = vadd.f32 %v350_v9, %v349_v34  ;;  %v352_v25 = vsel %vm1979_vm13, %v346_v35, 0.0  ;;  %v495_v12 = vmul.f32 %v1065_v6, %v1461_v1 }
  0x48   : > { %v347_v36 = vsel %vm1251_vm9, %v342_v53, 0.0  ;;  %v473_v17 = vmul.f32 0.5, %v472_v47  ;;  %v485_v63 = vmul.f32 0.5, %v484_v50  ;;  %v507_v55 = vmul.f32 %v1067_v14, %v1464_v56 }
  0x49   : > { %v353_v59 = vadd.f32 %v352_v25, %v351_v51  ;;  %v354_v60 = vsel %vm1979_vm13, %v347_v36, 0.0  ;;  %v496_v44 = vmul.f32 %v1065_v6, %v495_v12  ;;  %v532_v37 = vand.u32 2147483647, %v1506_v23  ;;  %v1538_v36 = vld [vmem:[%s1193_s21 + $0x1c] sm:$0x3] }
  0x4a   : > { %v474_v2 = vsub.f32 1.5, %v473_v17  ;;  %v486_v28 = vsub.f32 1.5, %v485_v63  ;;  %v508_v21 = vmul.f32 %v1067_v14, %v507_v55  ;;  %vm477_vm5 = vcmp.eq.f32.partialorder %v1457_v20, inf  ;;  %v343_v55 = vld [vmem:[%s1186_s18] sm:$0x1] }
  0x4b   : > { %v355_v58 = vadd.f32 %v354_v60, %v353_v59  ;;  %v497_v30 = vmul.f32 0.5, %v496_v44  ;;  %v480_v32 = vand.u32 2147483648, %v1457_v20  ;;  %v534_v26 = vsub.f32 0.0, %v530_v4  ;;  %v1551_v44 = vld [vmem:[%s1193_s21 + $0x26] sm:$0x3] }
  0x4c   : > { %v475_v11 = vmul.f32 %v1061_v41, %v474_v2  ;;  %v487_v10 = vmul.f32 %v1063_v62, %v486_v28  ;;  %v509_v33 = vmul.f32 0.5, %v508_v21  ;;  %vm479_vm6 = vcmp.eq.f32.partialorder %v1457_v20, 0.0 }
  0x4d   : > { %v356_v49 = vrot.slane %v355_v58, 4  ;;  %v498_v7 = vsub.f32 1.5, %v497_v30  ;;  %v535_v62 = vsub.f32 0.0, %v531_v38  ;;  %v536_v43 = vsub.f32 0.0, %v532_v37 }
  0x4e   : > { %v510_v42 = vsub.f32 1.5, %v509_v33  ;;  %vm489_vm7 = vcmp.eq.f32.partialorder %v1459_v5, inf  ;;  %vm491_vm9 = vcmp.eq.f32.partialorder %v1459_v5, 0.0  ;;  %v492_v27 = vand.u32 2147483648, %v1459_v5 }
  0x4f   : > { %v357_v45 = vadd.f32 %v356_v49, %v355_v58  ;;  %v499_v41 = vmul.f32 %v1065_v6, %v498_v7  ;;  %v537_v13 = vsub.f32 0.0, %v533_v40  ;;  %v476_v46 = vmul.f32 %v475_v11, %v1457_v20  ;;  %v1530_v6 = vld [vmem:[%s1193_s21 + $0x12] sm:$0x3]  ;;  %v995_v11 = vld [vmem:[%s1198_s24 + $0x8] sm:$0x3] }
  0x50   : > { %v488_v22 = vmul.f32 %v487_v10, %v1459_v5  ;;  %v511_v34 = vmul.f32 %v1067_v14, %v510_v42  ;;  %v538_v35 = vmul.f32 1.442695, %v534_v26  ;;  %v540_v9 = vmul.f32 1.442695, %v535_v62  ;;  %v996_v49 = vld [vmem:[%s1198_s24 + $0x12] sm:$0x3] }
  0x51   : > { %v358_v18 = vrot.slane %v357_v45, 2  ;;  %v542_v47 = vmul.f32 1.442695, %v536_v43  ;;  %v500_v53 = vmul.f32 %v499_v41, %v1461_v1  ;;  %v544_v51 = vmul.f32 1.442695, %v537_v13 }
  0x52   : > { %v744_v25 = vand.u32 2147483647, %v1524_v31  ;;  %v504_v12 = vand.u32 2147483648, %v1461_v1  ;;  %vm513_vm0 = vcmp.eq.f32.partialorder %v1464_v56, inf  ;;  %1068 = vpow2.f32 %v538_v35 }
  0x53   : > { %v359_v50 = vadd.f32 %v358_v18, %v357_v45  ;;  %v478_v17 = vsel %vm477_vm5, %v1457_v20, %v476_v46  ;;  %1070 = vpow2.f32 %v540_v9  ;;  %v745_v63 = vand.u32 2147483647, %v1530_v6  ;;  %v997_v18 = vld [vmem:[%s1198_s24 + $0x1c] sm:$0x3] }
  0x54   : > { %v490_v59 = vsel %vm489_vm7, %v1459_v5, %v488_v22  ;;  %v512_v60 = vmul.f32 %v511_v34, %v1464_v56  ;;  %vm515_vm2 = vcmp.eq.f32.partialorder %v1464_v56, 0.0  ;;  %1072 = vpow2.f32 %v542_v47 }
  0x55   : > { %v360_v14 = vrot.slane %v359_v50, 1  ;;  %v748_v2 = vsub.f32 0.0, %v744_v25  ;;  %v502_v21 = vsel %vm501_vm12, %v1461_v1, %v500_v53  ;;  %1074 = vpow2.f32 %v544_v51 }
  0x56   : > { %v746_v58 = vand.u32 2147483647, %v1538_v36  ;;  %v516_v30 = vand.u32 2147483648, %v1464_v56  ;;  %v520_v4 = vmax.f32 %v1506_v23, 0.0  ;;  %v521_v38 = vmax.f32 %v1509_v24, 0.0 }
  0x57   : > { %v361_v28 = vadd.f32 %v360_v14, %v359_v50  ;;  %v752_v10 = vmul.f32 1.442695, %v748_v2  ;;  %v747_v7 = vand.u32 2147483647, %v1551_v44  ;;  %v749_v37 = vsub.f32 0.0, %v745_v63 }
  0x58   : > { %v1069_v40 = vpop.eup %1068  ;;  %v1565_v42 = vsel %vm479_vm6, %v480_v32, %v478_v17  ;;  %v1569_v26 = vsel %vm491_vm9, %v492_v27, %v490_v59  ;;  %v1573_v45 = vsel %vm503_vm15, %v504_v12, %v502_v21  ;;  %v514_v41 = vsel %vm513_vm0, %v1464_v56, %v512_v60 }
  0x59   : > { %v362_v33 = vadd.f32 %v361_v28, %v343_v55  ;;  %v1071_v62 = vpop.eup %1070  ;;  %v546_v43 = vadd.f32 1.0, %v1069_v40  ;;  %v549_v13 = vmul.f32 -0.5, %v1069_v40  ;;  %vm715_vm10 = vcmp.ne.f32.partialorder %v995_v11, %v995_v11 }
  0x5a   : > { %v750_v20 = vsub.f32 0.0, %v746_v58  ;;  %v1073_v32 = vpop.eup %1072  ;;  %v555_v46 = vadd.f32 1.0, %v1071_v62  ;;  %v558_v5 = vmul.f32 -0.5, %v1071_v62  ;;  %vm716_vm11 = vcmp.ne.f32.partialorder %v996_v49, %v996_v49  ;;  %vm1584_vm7 = vmxor %vm715_vm10, %vm1149_vm4  ;;  %v998_v58 = vld [vmem:[%s1198_s24 + $0x26] sm:$0x3] }
  0x5b   : > { %363 = vst [vmem:[%s1186_s18] sm:$0x1] %v362_v33  ;;  %1076 = vpow2.f32 %v752_v10  ;;  %v1075_v27 = vpop.eup %1074  ;;  %v564_v1 = vadd.f32 1.0, %v1073_v32  ;;  %v751_v22 = vsub.f32 0.0, %v747_v7  ;;  %v754_v34 = vmul.f32 1.442695, %v749_v37  ;;  %vm1592_vm12 = vmxor %vm716_vm11, %vm1149_vm4 }
  0x5c   : > { %1078 = vlog2.f32 %v546_v43  ;;  %vm522_vm5 = vcmp.ne.f32.partialorder %v1498_v54, %v1498_v54  ;;  %v550_v35 = vadd.f32 1.0, %v549_v13  ;;  %v567_v9 = vmul.f32 -0.5, %v1073_v32 }
  0x5d   : > { %1080 = vlog2.f32 %v555_v46  ;;  %vm717_vm6 = vcmp.ne.f32.partialorder %v997_v18, %v997_v18  ;;  %v2015_v47 = vmov 0  ;;  %vm523_vm9 = vcmp.ne.f32.partialorder %v1503_v61, %v1503_v61 }
  0x5e   : > { %v2016_v47 = vsel %vm1584_vm7, 4294967295, %v2015_v47  ;;  %v552_v50 = vand.u32 2147483647, %v1069_v40  ;;  %v559_v53 = vadd.f32 1.0, %v558_v5  ;;  %1082 = vlog2.f32 %v564_v1  ;;  %vm1613_vm10 = vmxor %vm717_vm6, %vm1149_vm4 }
  0x5f   : > { %v573_v51 = vadd.f32 1.0, %v1075_v27  ;;  %v2017_v25 = vmov 0  ;;  %v561_v12 = vand.u32 2147483647, %v1071_v62  ;;  %v568_v14 = vadd.f32 1.0, %v567_v9 }
  0x60   : > { %v2018_v25 = vsel %vm1592_vm12, 4294967295, %v2017_v25  ;;  %v570_v17 = vand.u32 2147483647, %v1073_v32  ;;  %v576_v63 = vmul.f32 -0.5, %v1075_v27  ;;  %v1600_v55 = vsel %vm515_vm2, %v516_v30, %v514_v41 }
  0x61   : > { %1084 = vlog2.f32 %v573_v51  ;;  %v1604_v59 = vsel %vm1584_vm7, %v995_v11, 1.0  ;;  %v756_v60 = vmul.f32 1.442695, %v750_v20  ;;  %v1606_v2 = vpop.eup %1076  ;;  %v551_v28 = vmul.f32 %v1069_v40, %v550_v35 }
  0x62   : > { %v577_v21 = vadd.f32 1.0, %v576_v63  ;;  %v2019_v56 = vmov 0  ;;  %v1619_v30 = vsel %vm1592_vm12, %v996_v49, 1.0  ;;  %v1621_v11 = vmul.f32 1.442695, %v751_v22  ;;  %v1079_v10 = vpop.eup %1078 }
  0x63   : > { %v2020_v56 = vsel %vm1613_vm10, 4294967295, %v2019_v56  ;;  %vm1623_vm2 = vcmp.lt.f32.partialorder %v552_v50, 0.0004427343  ;;  %v560_v7 = vmul.f32 %v1071_v62, %v559_v53  ;;  %v579_v37 = vand.u32 2147483647, %v1075_v27  ;;  %v1081_v40 = vpop.eup %1080 }
  0x64   : > { %1086 = vpow2.f32 %v754_v34  ;;  %v548_v41 = vmul.f32 0.6931472, %v1079_v10  ;;  %vm1627_vm11 = vcmp.lt.f32.partialorder %v561_v12, 0.0004427343  ;;  %v569_v13 = vmul.f32 %v1073_v32, %v568_v14  ;;  %v1083_v20 = vpop.eup %1082 }
  0x65   : > { %vm1631_vm6 = vcmp.lt.f32.partialorder %v570_v17, 0.0004427343  ;;  %v557_v46 = vmul.f32 0.6931472, %v1081_v40  ;;  %v578_v5 = vmul.f32 %v1075_v27, %v577_v21  ;;  %vm718_vm0 = vcmp.ne.f32.partialorder %v998_v58, %v998_v58 }
  0x66   : > { %v1637_v62 = vsel %vm1613_vm10, %v997_v18, 1.0  ;;  %v554_v1 = vsel %vm1623_vm2, %v551_v28, %v548_v41  ;;  %v566_v22 = vmul.f32 0.6931472, %v1083_v20  ;;  %v991_v32 = vsel %vm1288_vm14, 1.0, %v1986_v0  ;;  %vm1674_vm2 = vmxor %vm718_vm0, %vm1149_vm4 }
  0x67   : > { %v992_v34 = vsel %vm1302_vm1, 1.0, %v1986_v0  ;;  %v1085_v35 = vpop.eup %1084  ;;  %v563_v27 = vsel %vm1627_vm11, %v560_v7, %v557_v46  ;;  %vm1649_vm15 = vcmp.lt.f32.partialorder %v579_v37, 0.0004427343  ;;  %v582_v18 = vadd.f32 %v554_v1, %v518_v19 }
  0x68   : > { %v695_v50 = vsel %vm1979_vm13, %v991_v32, 0.0  ;;  %v572_v53 = vsel %vm1631_vm6, %v569_v13, %v566_v22  ;;  %v575_v51 = vmul.f32 0.6931472, %v1085_v35  ;;  %v583_v12 = vadd.f32 %v563_v27, %v519_v3 }
  0x69   : > { %v696_v14 = vsel %vm1979_vm13, %v992_v34, 0.0  ;;  %v584_v63 = vadd.f32 %v572_v53, %v520_v4  ;;  %v586_v19 = vsel %vm522_vm5, %v1498_v54, %v582_v18  ;;  %v993_v28 = vsel %vm1313_vm3, 1.0, %v1986_v0 }
  0x6a   : > { %v1661_v17 = vpop.eup %1086  ;;  %v2029_v3 = vmov 0  ;;  %v732_v21 = vmax.f32 %v1524_v31, 0.0  ;;  %v581_v4 = vsel %vm1649_vm15, %v578_v5, %v575_v51  ;;  %v587_v54 = vsel %vm523_vm9, %v1503_v61, %v583_v12 }
  0x6b   : > { %v2030_v3 = vsel %vm1674_vm2, 4294967295, %v2029_v3  ;;  %v1686_v10 = vmax.f32 %v586_v19, %v1353_v8  ;;  %1088 = vpow2.f32 %v756_v60  ;;  %v585_v33 = vadd.f32 %v581_v4, %v521_v38 }
  0x6c   : > { %vm2031_vm4 = vcmp.ne.f32.partialorder %v1506_v23, %v1506_v23  ;;  %v1695_v37 = vmax.f32 %v587_v54, %v1364_v15  ;;  %v697_v40 = vadd.f32 %v696_v14, %v695_v50  ;;  %v698_v8 = vsel %vm1979_vm13, %v993_v28, 0.0 }
  0x6d   : > { %v588_v7 = vsel %vm2031_vm4, %v1506_v23, %v584_v63  ;;  %1090 = vlog2.f32 %v1686_v10  ;;  %v1704_v61 = vsel %vm1674_vm2, %v998_v58, 1.0  ;;  %vm2032_vm5 = vcmp.ne.f32.partialorder %v1509_v24, %v1509_v24 }
  0x6e   : > { %v1698_v41 = vmax.f32 %v588_v7, %v1368_v16  ;;  %v589_v23 = vsel %vm2032_vm5, %v1509_v24, %v585_v33  ;;  %1092 = vlog2.f32 %v1695_v37  ;;  %v613_v15 = vand.u32 2147483648, %v1686_v10 }
  0x6f   : > { %v1714_v38 = vmax.f32 %v589_v23, %v1374_v29  ;;  %v628_v43 = vand.u32 2147483648, %v1695_v37  ;;  %v994_v24 = vsel %vm1325_vm8, 1.0, %v1986_v0  ;;  %v699_v13 = vadd.f32 %v698_v8, %v697_v40 }
  0x70   : > { %1094 = vlog2.f32 %v1698_v41  ;;  %v611_v29 = vand.u32 2147483647, %v1686_v10  ;;  %v643_v20 = vand.u32 2147483648, %v1698_v41  ;;  %v1730_v46 = vor.u32 1.1754944e-38, %v613_v15 }
  0x71   : > { %1096 = vrcp.f32 %v1686_v10  ;;  %v1724_v49 = vpop.eup %1088  ;;  %v626_v5 = vand.u32 2147483647, %v1695_v37  ;;  %v641_v1 = vand.u32 2147483647, %v1698_v41  ;;  %v1736_v32 = vor.u32 1.1754944e-38, %v628_v43 }
  0x72   : > { %1098 = vlog2.f32 %v1714_v38  ;;  %v656_v34 = vand.u32 2147483647, %v1714_v38  ;;  %v658_v35 = vand.u32 2147483648, %v1714_v38  ;;  %v1744_v18 = vor.u32 1.1754944e-38, %v643_v20 }
  0x73   : > { %1100 = vrcp.f32 %v1695_v37  ;;  %v1091_v22 = vpop.eup %1090  ;;  %v700_v50 = vsel %vm1979_vm13, %v994_v24, 0.0  ;;  %vm1750_vm11 = vcmp.eq.f32.partialorder %v611_v29, 8.507059e+37  ;;  %v760_v4 = vadd.f32 1.0, %v1606_v2 }
  0x74   : > { %1102 = vrcp.f32 %v1698_v41  ;;  %v1093_v27 = vpop.eup %1092  ;;  %v1741_v9 = vmul.f32 0.6931472, %v1091_v22  ;;  %v1755_v14 = vor.u32 1.1754944e-38, %v658_v35  ;;  %v701_v63 = vadd.f32 %v700_v50, %v699_v13 }
  0x75   : > { %1104 = vrcp.f32 %v1714_v38  ;;  %v1748_v51 = vmul.f32 0.6931472, %v1093_v27  ;;  %v763_v54 = vmul.f32 -0.5, %v1606_v2  ;;  %v766_v33 = vand.u32 2147483647, %v1606_v2 }
  0x76   : > { %v1095_v53 = vpop.eup %1094  ;;  %1106 = vpow2.f32 %v1621_v11  ;;  %vm1764_vm5 = vcmp.eq.f32.partialorder %v626_v5, 8.507059e+37  ;;  %v702_v23 = vrot.slane %v701_v63, 4  ;;  %v769_v11 = vadd.f32 1.0, %v1661_v17 }
  0x77   : > { %v1097_v19 = vpop.eup %1096  ;;  %v1758_v28 = vmul.f32 0.6931472, %v1095_v53  ;;  %vm1771_vm13 = vcmp.eq.f32.partialorder %v641_v1, 8.507059e+37  ;;  %1108 = vlog2.f32 %v760_v4  ;;  %v764_v13 = vadd.f32 1.0, %v763_v54 }
  0x78   : > { %v1099_v7 = vpop.eup %1098  ;;  %v603_v40 = vmul.f32 %v1097_v19, %v1686_v10  ;;  %vm608_vm4 = vweird.f32 %v1097_v19  ;;  %vm1775_vm6 = vcmp.lt.f32.partialorder %v766_v33, 0.0004427343  ;;  %vm1780_vm15 = vcmp.eq.f32.partialorder %v656_v34, 8.507059e+37 }
  0x79   : > { %v1101_v15 = vpop.eup %1100  ;;  %v1769_v43 = vmul.f32 0.6931472, %v1099_v7  ;;  %v703_v27 = vadd.f32 %v702_v23, %v701_v63  ;;  %v1786_v53 = vmul.f32 %v1606_v2, %v764_v13  ;;  %1110 = vlog2.f32 %v769_v11 }
  0x7a   : > { %v1103_v20 = vpop.eup %1102  ;;  %v604_v5 = vsub.f32 1.0, %v603_v40  ;;  %v618_v22 = vmul.f32 %v1101_v15, %v1695_v37  ;;  %vm2043_vm2 = vweird.f32 %v1686_v10  ;;  %v772_v2 = vmul.f32 -0.5, %v1661_v17 }
  0x7b   : > { %v1105_v1 = vpop.eup %1104  ;;  %v633_v50 = vmul.f32 %v1103_v20, %v1698_v41  ;;  %vm1794_vm10 = vmor %vm2043_vm2, %vm608_vm4  ;;  %v704_v40 = vrot.slane %v703_v27, 2  ;;  %v775_v23 = vand.u32 2147483647, %v1661_v17  ;;  %vm2046_vm0 = vweird.f32 %v1101_v15 }
  0x7c   : > { %v1788_v4 = vpop.eup %1106  ;;  %v605_v54 = vmul.f32 %v1097_v19, %v604_v5  ;;  %v619_v33 = vsub.f32 1.0, %v618_v22  ;;  %v648_v7 = vmul.f32 %v1105_v1, %v1714_v38  ;;  %v778_v22 = vadd.f32 1.0, %v1724_v49 }
  0x7d   : > { %v634_v63 = vsub.f32 1.0, %v633_v50  ;;  %v1109_v58 = vpop.eup %1108  ;;  %vm2047_vm9 = vweird.f32 %v1695_v37  ;;  %v705_v50 = vadd.f32 %v704_v40, %v703_v27  ;;  %v773_v60 = vadd.f32 1.0, %v772_v2 }
  0x7e   : > { %v606_v11 = vadd.f32 %v1097_v19, %v605_v54  ;;  %v620_v13 = vmul.f32 %v1101_v15, %v619_v33  ;;  %v649_v5 = vsub.f32 1.0, %v648_v7  ;;  %vm1804_vm12 = vmor %vm2047_vm9, %vm2046_vm0  ;;  %vm1808_vm2 = vcmp.lt.f32.partialorder %v775_v23, 0.0004427343 }
  0x7f   : > { %v635_v0 = vmul.f32 %v1103_v20, %v634_v63  ;;  %vm2052_vm4 = vweird.f32 %v1103_v20  ;;  %vm2053_vm7 = vweird.f32 %v1698_v41  ;;  %v762_v63 = vmul.f32 0.6931472, %v1109_v58  ;;  %v1111_v27 = vpop.eup %1110 }
  0x80   : > { %v610_v54 = vsel %vm1794_vm10, %v1097_v19, %v606_v11  ;;  %v621_v33 = vadd.f32 %v1101_v15, %v620_v13  ;;  %vm1817_vm8 = vmor %vm2053_vm7, %vm2052_vm4  ;;  %v650_v7 = vmul.f32 %v1105_v1, %v649_v5  ;;  %vm2056_vm9 = vweird.f32 %v1105_v1  ;;  %v686_v13 = vld [vmem:[%s1186_s18 + $0x4] sm:$0x1] }
  0x81   : > { %v615_v40 = vsel %vm1750_vm11, %v1730_v46, %v610_v54  ;;  %v636_v2 = vadd.f32 %v1103_v20, %v635_v0  ;;  %vm2057_vm0 = vweird.f32 %v1714_v38  ;;  %v706_v41 = vrot.slane %v705_v50, 1 }
  0x82   : > { %vm1827_vm10 = vmor %vm2057_vm0, %vm2056_vm9  ;;  %v774_v34 = vmul.f32 %v1661_v17, %v773_v60  ;;  %v616_v23 = vmul.f32 %v615_v40, %v1565_v42  ;;  %v625_v58 = vsel %vm1804_vm12, %v1101_v15, %v621_v33  ;;  %v651_v11 = vadd.f32 %v1105_v1, %v650_v7 }
  0x83   : > { %v768_v0 = vsel %vm1775_vm6, %v1786_v53, %v762_v63  ;;  %v630_v38 = vsel %vm1764_vm5, %v1736_v32, %v625_v58  ;;  %v640_v46 = vsel %vm1817_vm8, %v1103_v20, %v636_v2  ;;  %v707_v12 = vadd.f32 %v706_v41, %v705_v50 }
  0x84   : > { %vm736_vm7 = vcmp.ne.f32.partialorder %v1524_v31, %v1524_v31  ;;  %vm737_vm12 = vcmp.ne.f32.partialorder %v1530_v6, %v1530_v6  ;;  %v771_v42 = vmul.f32 0.6931472, %v1111_v27  ;;  %v631_v17 = vmul.f32 %v630_v38, %v1569_v26 }
  0x85   : > { %v645_v60 = vsel %vm1771_vm13, %v1744_v18, %v640_v46  ;;  %v655_v32 = vsel %vm1827_vm10, %v1105_v1, %v651_v11  ;;  %v662_v8 = vadd.f32 %v616_v23, %v1741_v9  ;;  %v708_v20 = vadd.f32 %v707_v12, %v686_v13 }
  0x86   : > { %v646_v15 = vmul.f32 %v645_v60, %v1573_v45  ;;  %v660_v29 = vsel %vm1780_vm15, %v1755_v14, %v655_v32  ;;  %v777_v53 = vsel %vm1808_vm2, %v774_v34, %v771_v42  ;;  %v663_v24 = vadd.f32 %v631_v17, %v1748_v51 }
  0x87   : > { %v661_v26 = vmul.f32 %v660_v29, %v1600_v55  ;;  %v667_v18 = vsel %vm1288_vm14, %v662_v8, 0.0  ;;  %1112 = vlog2.f32 %v778_v22  ;;  %vm2060_vm8 = vcmask 1041408   ;;  %709 = vst [vmem:[%s1186_s18 + $0x4] sm:$0x1] %v708_v20 }
  0x88   : > { %v664_v9 = vadd.f32 %v646_v15, %v1758_v28  ;;  %v671_v45 = vsel %vm2060_vm8, %v667_v18, 0.0  ;;  %vm738_vm13 = vcmp.ne.f32.partialorder %v1538_v36, %v1538_v36  ;;  %v781_v14 = vmul.f32 -0.5, %v1724_v49  ;;  %vm2061_vm14 = vmmov %vm2060_vm8 }
  0x89   : > { %v784_v16 = vand.u32 2147483647, %v1724_v49  ;;  %v665_v55 = vadd.f32 %v661_v26, %v1769_v43  ;;  %v668_v51 = vsel %vm1302_vm1, %v663_v24, 0.0  ;;  %v787_v39 = vadd.f32 1.0, %v1788_v4  ;;  %vm2065_vm6 = vmmov %vm2060_vm8 }
  0x8a   : > { %v790_v35 = vmul.f32 -0.5, %v1788_v4  ;;  %v669_v28 = vsel %vm1313_vm3, %v664_v9, 0.0  ;;  %v672_v1 = vsel %vm2061_vm14, %v668_v51, 0.0  ;;  %v782_v5 = vadd.f32 1.0, %v781_v14  ;;  %vm2066_vm1 = vmmov %vm2065_vm6 }
  0x8b   : > { %vm1880_vm15 = vcmp.lt.f32.partialorder %v784_v16, 0.0004427343  ;;  %vm2064_vm11 = vnez %v2006_v57  ;;  %v673_v10 = vadd.f32 %v672_v1, %v671_v45  ;;  %v674_v48 = vsel %vm2065_vm6, %v669_v28, 0.0  ;;  %vm2077_vm10 = vmmov %vm2066_vm1 }
  0x8c   : > { %v670_v43 = vsel %vm2064_vm11, %v665_v55, 0.0  ;;  %1114 = vlog2.f32 %v787_v39  ;;  %vm739_vm5 = vcmp.ne.f32.partialorder %v1551_v44, %v1551_v44  ;;  %v783_v52 = vmul.f32 %v1724_v49, %v782_v5  ;;  %vm2080_vm8 = vmmov %vm2066_vm1 }
  0x8d   : > { %v676_v50 = vsel %vm2066_vm1, %v670_v43, 0.0  ;;  %v791_v54 = vadd.f32 1.0, %v790_v35  ;;  %v793_v33 = vand.u32 2147483647, %v1788_v4  ;;  %v1113_v37 = vpop.eup %1112  ;;  %v675_v7 = vadd.f32 %v674_v48, %v673_v10  ;;  %vm2082_vm14 = vmmov %vm2066_vm1 }
  0x8e   : > { %v796_v57 = vadd.f32 %v768_v0, %v732_v21  ;;  %v2067_v63 = vmax.f32 %v1530_v6, 0.0  ;;  %v812_v40 = vadd.f32 0.1, %v1604_v59  ;;  %v780_v2 = vmul.f32 0.6931472, %v1113_v37  ;;  %vm2084_vm11 = vmmov %vm2066_vm1 }
  0x8f   : > { %v792_v19 = vmul.f32 %v1788_v4, %v791_v54  ;;  %vm1898_vm3 = vcmp.lt.f32.partialorder %v793_v33, 0.0004427343  ;;  %v813_v49 = vadd.f32 0.1, %v1619_v30  ;;  %v677_v34 = vadd.f32 %v676_v50, %v675_v7  ;;  %v666_v50 = vld [vmem:[%s1186_s18 + $0x1] sm:$0x1] }
  0x90   : > { %v797_v27 = vadd.f32 %v777_v53, %v2067_v63  ;;  %v800_v21 = vsel %vm736_vm7, %v1524_v31, %v796_v57  ;;  %v814_v58 = vadd.f32 0.1, %v1637_v62  ;;  %v786_v4 = vsel %vm1880_vm15, %v783_v52, %v780_v2  ;;  %vm2078_vm7 = vmmov %vm2066_vm1 }
  0x91   : > { %v804_v11 = vsub.f32 %v800_v21, %v1604_v59  ;;  %v815_v0 = vadd.f32 0.1, %v1704_v61  ;;  %v678_v46 = vrot.slane %v677_v34, 4  ;;  %v2070_v31 = vmax.f32 %v1538_v36, 0.0  ;;  %vm2083_vm15 = vmmov %vm2066_vm1 }
  0x92   : > { %v801_v23 = vsel %vm737_vm12, %v1530_v6, %v797_v27  ;;  %v1115_v38 = vpop.eup %1114  ;;  %1116 = vrcp.f32 %v812_v40  ;;  %v2071_v42 = vmov 0.0   ;;  %vm2072_vm2 = vnez %v2016_v47  ;;  %vm2079_vm12 = vmmov %vm2066_vm1 }
  0x93   : > { %v805_v13 = vsub.f32 %v801_v23, %v1619_v30  ;;  %v798_v12 = vadd.f32 %v786_v4, %v2070_v31  ;;  %v1003_v6 = vsel %vm2072_vm2, 1.0, %v2071_v42  ;;  %v789_v17 = vmul.f32 0.6931472, %v1115_v38 }
  0x94   : > { %v808_v60 = vand.u32 2147483647, %v804_v11  ;;  %1118 = vrcp.f32 %v813_v49  ;;  %v679_v8 = vadd.f32 %v678_v46, %v677_v34  ;;  %vm2073_vm4 = vnez %v2018_v25 }
  0x95   : > { %v809_v32 = vand.u32 2147483647, %v805_v13  ;;  %v802_v59 = vsel %vm738_vm13, %v1538_v36, %v798_v12  ;;  %1120 = vrcp.f32 %v814_v58  ;;  %v1004_v30 = vsel %vm2073_vm4, 1.0, %v2071_v42  ;;  %vm2081_vm13 = vmmov %vm2066_vm1  ;;  %v844_v13 = vld [vmem:[%s1186_s18 + $0x5] sm:$0x1] }
  0x96   : > { %v795_v15 = vsel %vm1898_vm3, %v792_v19, %v789_v17  ;;  %v806_v29 = vsub.f32 %v802_v59, %v1637_v62  ;;  %1122 = vrcp.f32 %v815_v0  ;;  %vm2074_vm9 = vnez %v2020_v56  ;;  %v824_v12 = vld [vmem:[%s1186_s18 + $0x2] sm:$0x1] }
  0x97   : > { %v1005_v20 = vsel %vm2074_vm9, 1.0, %v2071_v42  ;;  %v680_v53 = vrot.slane %v679_v8, 2  ;;  %v2075_v26 = vmax.f32 %v1551_v44, 0.0  ;;  %vm2076_vm0 = vnez %v2030_v3 }
  0x98   : > { %v1006_v36 = vsel %vm2076_vm0, 1.0, %v2071_v42  ;;  %v853_v18 = vsel %vm2077_vm10, %v1003_v6, 0.0  ;;  %v810_v9 = vand.u32 2147483647, %v806_v29  ;;  %v854_v45 = vsel %vm2078_vm7, %v1004_v30, 0.0  ;;  %v1117_v14 = vpop.eup %1116 }
  0x99   : > { %v799_v24 = vadd.f32 %v795_v15, %v2075_v26  ;;  %v856_v62 = vsel %vm2079_vm12, %v1005_v20, 0.0  ;;  %v681_v16 = vadd.f32 %v680_v53, %v679_v8  ;;  %v855_v51 = vadd.f32 %v854_v45, %v853_v18 }
  0x9a   : > { %v1119_v39 = vpop.eup %1118  ;;  %v820_v28 = vmul.f32 %v1117_v14, %v808_v60  ;;  %v858_v1 = vsel %vm2080_vm8, %v1006_v36, 0.0 }
  0x9b   : > { %v803_v55 = vsel %vm739_vm5, %v1551_v44, %v799_v24  ;;  %v1121_v5 = vpop.eup %1120  ;;  %v682_v22 = vrot.slane %v681_v16, 1  ;;  %v821_v43 = vmul.f32 %v1119_v39, %v809_v32  ;;  %v857_v10 = vadd.f32 %v856_v62, %v855_v51 }
  0x9c   : > { %v807_v35 = vsub.f32 %v803_v55, %v1704_v61  ;;  %v1123_v48 = vpop.eup %1122  ;;  %v822_v54 = vmul.f32 %v1121_v5, %v810_v9  ;;  %v825_v33 = vsel %vm2072_vm2, %v820_v28, 0.0 }
  0x9d   : > { %v683_v44 = vadd.f32 %v682_v22, %v681_v16  ;;  %v826_v37 = vsel %vm2073_vm4, %v821_v43, 0.0  ;;  %v829_v61 = vsel %vm2081_vm13, %v825_v33, 0.0  ;;  %v859_v7 = vadd.f32 %v858_v1, %v857_v10 }
  0x9e   : > { %v811_v52 = vand.u32 2147483647, %v807_v35  ;;  %v827_v63 = vsel %vm2074_vm9, %v822_v54, 0.0  ;;  %v830_v27 = vsel %vm2082_vm14, %v826_v37, 0.0 }
  0x9f   : > { %v684_v40 = vadd.f32 %v683_v44, %v666_v50  ;;  %v831_v2 = vadd.f32 %v830_v27, %v829_v61  ;;  %v832_v19 = vsel %vm2083_vm15, %v827_v63, 0.0  ;;  %v860_v47 = vrot.slane %v859_v7, 4 }
  0xa0   : > { %v823_v57 = vmul.f32 %v1123_v48, %v811_v52 }
  0xa1   : > { %685 = vst [vmem:[%s1186_s18 + $0x1] sm:$0x1] %v684_v40  ;;  %v833_v25 = vadd.f32 %v832_v19, %v831_v2  ;;  %v861_v34 = vadd.f32 %v860_v47, %v859_v7 }
  0xa2   : > { %v828_v41 = vsel %vm2076_vm0, %v823_v57, 0.0 }
  0xa3   : > { %v834_v49 = vsel %vm2084_vm11, %v828_v41, 0.0  ;;  %v862_v21 = vrot.slane %v861_v34, 2 }
  0xa4   : > { %v835_v56 = vadd.f32 %v834_v49, %v833_v25 }
  0xa5   : > { %v863_v58 = vadd.f32 %v862_v21, %v861_v34 }
  0xa6   : > { %v836_v23 = vrot.slane %v835_v56, 4 }
  0xa7   : > { %v864_v11 = vrot.slane %v863_v58, 1 }
  0xa8   : > { %v837_v4 = vadd.f32 %v836_v23, %v835_v56 }
  0xa9   : > { %v865_v38 = vadd.f32 %v864_v11, %v863_v58 }
  0xaa   : > { %v838_v0 = vrot.slane %v837_v4, 2 }
  0xab   : > { %v866_v3 = vadd.f32 %v865_v38, %v844_v13 }
  0xac   : > { %v839_v46 = vadd.f32 %v838_v0, %v837_v4 }
  0xad   : > { %867 = vst [vmem:[%s1186_s18 + $0x5] sm:$0x1] %v866_v3 }
  0xae   : > { %v840_v31 = vrot.slane %v839_v46, 1 }
  0xb0   : > { %v841_v42 = vadd.f32 %v840_v31, %v839_v46 }
  0xb2   : > { %v842_v6 = vadd.f32 %v841_v42, %v824_v12 }
  0xb4   : > { %843 = vst [vmem:[%s1186_s18 + $0x2] sm:$0x1] %v842_v6 }
  0xb5 PF: > { %s12_s11 = sadd.s32 1, %s1146_s11   ;;  %s2085_s9 = smov %s1142_s10 }
  0xb6   : > { %p9_p6 = scmp.ge.s32.totalorder %s12_s11, 4   ;;  %s2086_s10 = smov %s2088_s12 }
  0xb8   :  { %11 = sbr.rel (!%p9_p6) target bundleno = 2 (0x2), region = 73 }

</bundles_post_ra>
